<compile_context>
chip_gen: v7x
topology: tpu7x:2x2x1
jax: 0.10.0
libtpu: 0.0.40
codegen_flags: <defaults>
</compile_context>

<pallas_src>
import functools

import jax
import jax.numpy as jnp
from jax import lax
from jax.experimental import pallas as pl
from jax.experimental.pallas import tpu as pltpu


# ----------------------------------------------------------------------------
# Pallas kernel: grid = (batch, query-tile, key-tile); key axis is the
# (sequential) online-softmax reduction, batch/query are parallel.
# ----------------------------------------------------------------------------
def _bca_attn_kernel(fself_ref, fx_ref, fy_ref, x_ref, w_up_ref, c_up_ref,
                     o_ref,
                     acc_sc, m_sc, l_sc,
                     *, compute_dtype):
    k = pl.program_id(2)

    @pl.when(k == 0)
    def _():
        m_sc[...] = jnp.full_like(m_sc, -jnp.inf)
        l_sc[...] = jnp.zeros_like(l_sc)
        acc_sc[...] = jnp.zeros_like(acc_sc)

    f_x = fx_ref[0]            # (mid, TQ)  bf16, query tile
    f_y = fy_ref[0]            # (mid, TK)  bf16, key tile
    f_self = fself_ref[0]      # (mid, TK)  bf16, key tile

    # simT[kk, t] = sum_m f_y[m, kk] * f_x[m, t]   (mid**-0.5 folded into f_x).
    # Transposed layout keeps the query axis lane-dense, so the softmax
    # reductions below are cheap sublane reductions.
    sim_t = lax.dot_general(f_y, f_x, (((0,), (0,)), ((), ())),
                            preferred_element_type=jnp.float32)   # (TK, TQ)

    # Online softmax update (f32), normalization deferred past the PV matmul.
    m_prev = m_sc[...]                                             # (1, TQ)
    m_new = jnp.maximum(m_prev, jnp.max(sim_t, axis=0, keepdims=True))
    alpha = jnp.exp(m_prev - m_new)                                # (1, TQ)
    e = jnp.exp(sim_t - m_new)                                     # (TK, TQ)
    l_sc[...] = alpha * l_sc[...] + jnp.sum(e, axis=0, keepdims=True)
    # Unnormalized foutT accumulation: (mid, TK) @ (TK, TQ) -> (mid, TQ).
    acc_sc[...] = alpha * acc_sc[...] + jnp.dot(
        f_self, e.astype(compute_dtype), preferred_element_type=jnp.float32)
    m_sc[...] = m_new

    @pl.when(k == pl.num_programs(2) - 1)
    def _():
        # Deferred normalization on the tiny (mid, TQ) accumulator only.
        inv_l = pl.reciprocal(l_sc[...], approx=True)              # (1, TQ)
        fout_t = (acc_sc[...] * inv_l).astype(compute_dtype)       # (mid, TQ)
        # Folded f_up (1x1 conv + BN) and residual add, in f32.
        up = jnp.dot(w_up_ref[...], fout_t,
                     preferred_element_type=jnp.float32) + c_up_ref[...]
        o_ref[0] = x_ref[0] + up                                   # (Cx, TQ)


def _pick_tile(n, cap):
    """Largest tile in {512,256,128} that divides n and is <= cap."""
    for t in (512, 256, 128):
        if t <= cap and n % t == 0:
            return t
    return n  # N not a multiple of 128 -> single full tile (masked stores)


def _vmem_limit_bytes(tq, tk, mid, cx):
    """Explicit scoped-VMEM budget (default 16/32 MiB is generation-dependent)."""
    cd = 2                                               # bf16 operand bytes
    blk_in = mid * tq * cd + 2 * mid * tk * cd + cx * tq * 4
    blk_out = cx * tq * 4
    dbuf = 2 * (blk_in + blk_out)                        # double buffering
    scratch = mid * tq * 4 + 2 * tq * 4
    temps = tq * tk * (4 + 4 + cd) + 8 * tq * 4          # simT + e (f32) + e bf16
    weights = cx * mid * cd + cx * 4
    est = dbuf + scratch + temps + weights
    return int(min(max(2 * est, 16 * 1024 * 1024), 64 * 1024 * 1024))


def bca_pallas(x_nchw, y_nchw, params, *, scale=False,
               compute_dtype=jnp.bfloat16):
    """x_nchw: (B, Cx, H, W), y_nchw: (B, Cy, H, W) -> (B, Cx, H, W)."""
    B, Cx, H, W = x_nchw.shape
    Cy = y_nchw.shape[1]
    N = H * W
    mid = params["A_x"].shape[1]

    # Lane-dense channel-major layout: pure reshape, no transposes.
    x_flat = x_nchw.reshape(B, Cx, N)
    y_flat = y_nchw.reshape(B, Cy, N)

    # Folded weights channel-major; fold the optional mid**-0.5 into f_x.
    s = (mid ** -0.5) if scale else 1.0
    w_xcat = jnp.concatenate([params["A_self"].T, params["A_x"].T * s],
                             axis=0).astype(compute_dtype)          # (2*mid, Cx)
    c_xcat = jnp.concatenate([params["c_self"], params["c_x"] * s]
                             ).reshape(2 * mid, 1).astype(jnp.float32)
    w_y = params["A_y"].T.astype(compute_dtype)                     # (mid, Cy)
    c_y = params["c_y"].reshape(mid, 1).astype(jnp.float32)
    w_up = params["A_up"].T.astype(compute_dtype)                   # (Cx, mid)
    c_up = params["c_up"].reshape(Cx, 1).astype(jnp.float32)

    # ---- Projections hoisted out of the attention grid (tiny XLA matmuls). --
    # Emitting bf16 f_*^T costs 3*mid*N*2 bytes of HBM traffic (negligible) and
    # removes the per-batch cold step + cross-q scratch dependency so the query
    # axis can be megacore-parallel.
    xb = x_flat.astype(compute_dtype)
    yb = y_flat.astype(compute_dtype)
    fxc = jnp.einsum("mc,bcn->bmn", w_xcat, xb,
                     preferred_element_type=jnp.float32) + c_xcat[None]
    f_self_t = fxc[:, :mid].astype(compute_dtype)                   # (B, mid, N)
    f_x_t = fxc[:, mid:].astype(compute_dtype)                      # (B, mid, N)
    f_y_t = (jnp.einsum("mc,bcn->bmn", w_y, yb,
                        preferred_element_type=jnp.float32)
             + c_y[None]).astype(compute_dtype)                     # (B, mid, N)

    # VMEM-budget-aware tiles: softmax temporaries ~10*TQ*TK bytes stay far
    # under the scoped limit on every generation (incl. v7x's 64 MiB physical).
    tq = _pick_tile(N, 256)
    tk = _pick_tile(N, 1024)
    grid = (B, N // tq, N // tk)

    kernel = functools.partial(_bca_attn_kernel, compute_dtype=compute_dtype)

    def wspec(shape):
        return pl.BlockSpec(shape, lambda b, q, k: (0,) * len(shape))

    cost = pl.CostEstimate(
        flops=int(B * (4 * mid * N * N + 6 * N * N + 2 * Cx * mid * N)),
        transcendentals=int(B * N * N),
        bytes_accessed=int(B * N * (3 * mid * 2 + 2 * Cx * 4)),
    )

    out_flat = pl.pallas_call(
        kernel,
        out_shape=jax.ShapeDtypeStruct((B, Cx, N), jnp.float32),
        grid=grid,
        in_specs=[
            pl.BlockSpec((1, mid, tk), lambda b, q, k: (b, 0, k)),  # f_self^T key tile
            pl.BlockSpec((1, mid, tq), lambda b, q, k: (b, 0, q)),  # f_x^T  query tile
            pl.BlockSpec((1, mid, tk), lambda b, q, k: (b, 0, k)),  # f_y^T  key tile
            pl.BlockSpec((1, Cx, tq), lambda b, q, k: (b, 0, q)),   # x residual tile
            wspec((Cx, mid)),                                       # folded f_up weight
            wspec((Cx, 1)),                                         # folded f_up bias
        ],
        out_specs=pl.BlockSpec((1, Cx, tq), lambda b, q, k: (b, 0, q)),
        scratch_shapes=[
            pltpu.VMEM((mid, tq), jnp.float32),   # unnormalized foutT accumulator
            pltpu.VMEM((1, tq), jnp.float32),     # running max
            pltpu.VMEM((1, tq), jnp.float32),     # running sum
        ],
        compiler_params=pltpu.CompilerParams(
            dimension_semantics=("parallel", "parallel", "arbitrary"),
            vmem_limit_bytes=_vmem_limit_bytes(tq, tk, mid, Cx)),
        cost_estimate=cost,
    )(f_self_t, f_x_t, f_y_t, x_flat, w_up, c_up)

    return out_flat.reshape(B, Cx, H, W)


# ----------------------------------------------------------------------------
# Parameter construction (deterministic) + BN folding glue.
# ----------------------------------------------------------------------------
_EPS = 1e-5


def _fold_double(w1, g1, b1, m1, v1, w2, g2, b2, m2, v2):
    """Fold conv1x1(w1) -> BN -> conv1x1(w2) -> BN into z @ A + c."""
    s1 = g1 / jnp.sqrt(v1 + _EPS)
    o1 = b1 - m1 * s1
    s2 = g2 / jnp.sqrt(v2 + _EPS)
    o2 = b2 - m2 * s2
    A = ((w1.T * s1) @ w2.T) * s2          # (cin, mid)
    c = (o1 @ w2.T) * s2 + o2              # (mid,)
    return A, c


def _fold_single(w, g, b, m, v):
    """Fold conv1x1(w) -> BN into z @ A + c.  w: (cout, cin)."""
    s = g / jnp.sqrt(v + _EPS)
    A = w.T * s                            # (cin, cout)
    c = b - m * s                          # (cout,)
    return A, c


def make_params(key, xin, yin, mid):
    ks = jax.random.split(key, 32)
    i = iter(range(32))

    def conv(k, cout, cin):
        return 0.2 * jax.random.normal(k, (cout, cin), jnp.float32)

    def bn(k, c):
        k1, k2, k3, k4 = jax.random.split(k, 4)
        gamma = 1.0 + 0.1 * jax.random.normal(k1, (c,), jnp.float32)
        beta = 0.1 * jax.random.normal(k2, (c,), jnp.float32)
        mean = 0.1 * jax.random.normal(k3, (c,), jnp.float32)
        var = 1.0 + 0.1 * jnp.abs(jax.random.normal(k4, (c,), jnp.float32))
        return gamma, beta, mean, var

    def branch(cin):
        w1 = conv(ks[next(i)], mid, cin)
        bn1 = bn(ks[next(i)], mid)
        w2 = conv(ks[next(i)], mid, mid)
        bn2 = bn(ks[next(i)], mid)
        return _fold_double(w1, *bn1, w2, *bn2)

    A_self, c_self = branch(xin)
    A_x, c_x = branch(xin)
    A_y, c_y = branch(yin)

    # NOTE: the original module zero-inits the f_up BN (block is an exact
    # identity at init); use nonzero deterministic values so the kernel's
    # compute path is actually exercised.
    w_up = conv(ks[next(i)], xin, mid)
    bn_up = bn(ks[next(i)], xin)
    A_up, c_up = _fold_single(w_up, *bn_up)

    return {"A_self": A_self, "c_self": c_self,
            "A_x": A_x, "c_x": c_x,
            "A_y": A_y, "c_y": c_y,
            "A_up": A_up, "c_up": c_up}


# ----------------------------------------------------------------------------
# Pure-JAX f32 reference (same folded params) for a correctness check.
# ----------------------------------------------------------------------------
def bca_reference(x_nchw, y_nchw, p, *, scale=False):
    B, Cx, H, W = x_nchw.shape
    Cy = y_nchw.shape[1]
    N = H * W
    mid = p["A_x"].shape[1]
    xf = jnp.transpose(x_nchw.reshape(B, Cx, N), (0, 2, 1))
    yf = jnp.transpose(y_nchw.reshape(B, Cy, N), (0, 2, 1))
    f_self = xf @ p["A_self"] + p["c_self"]
    f_x = xf @ p["A_x"] + p["c_x"]
    f_y = yf @ p["A_y"] + p["c_y"]
    sim = jnp.einsum("bnm,bkm->bnk", f_x, f_y)
    if scale:
        sim = sim * (mid ** -0.5)
    sm = jax.nn.softmax(sim, axis=-1)
    fout = jnp.einsum("bnk,bkm->bnm", sm, f_self)
    up = fout @ p["A_up"] + p["c_up"]
    out = xf + up
    return jnp.transpose(out, (0, 2, 1)).reshape(B, Cx, H, W)


if __name__ == "__main__":
    key = jax.random.PRNGKey(0)
    kx, ky, kp = jax.random.split(key, 3)

    B, Cx, Cy, mid, H, W = 2, 4, 6, 8, 16, 16
    x = jax.random.normal(kx, (B, Cx, H, W), jnp.float32)
    y = jax.random.normal(ky, (B, Cy, H, W), jnp.float32)
    params = make_params(kp, Cx, Cy, mid)

    for scale in (False, True):
        out = jax.block_until_ready(bca_pallas(x, y, params, scale=scale))
        ref = bca_reference(x, y, params, scale=scale)
        assert out.shape == (B, Cx, H, W)
        # bf16 MXU operands + approx reciprocal -> loose-but-tight-enough tol.
        assert jnp.allclose(out, ref, atol=2e-2, rtol=2e-2), \
            f"mismatch vs reference (scale={scale})"

    print("KERNEL_OK")
</pallas_src>

<mosaic_0001>
module attributes {stable_mosaic.version = 11 : i64} {
  func.func @_bca_attn_kernel(%arg0: i32, %arg1: i32, %arg2: i32, %arg3: memref<1x8x256xbf16, #tpu.memory_space<vmem>>, %arg4: memref<1x8x256xbf16, #tpu.memory_space<vmem>>, %arg5: memref<1x8x256xbf16, #tpu.memory_space<vmem>>, %arg6: memref<1x4x256xf32, #tpu.memory_space<vmem>>, %arg7: memref<4x8xbf16, #tpu.memory_space<vmem>>, %arg8: memref<4x1xf32, #tpu.memory_space<vmem>>, %arg9: memref<1x4x256xf32, #tpu.memory_space<vmem>>, %arg10: memref<8x256xf32, #tpu.memory_space<vmem>>, %arg11: memref<1x256xf32, #tpu.memory_space<vmem>>, %arg12: memref<1x256xf32, #tpu.memory_space<vmem>>) attributes {dimension_semantics = [#tpu.dimension_semantics<parallel>, #tpu.dimension_semantics<parallel>, #tpu.dimension_semantics<arbitrary>], iteration_bounds = array<i64: 2, 1, 1>, scalar_prefetch = 0 : i64, scratch_operands = 3 : i64, tpu.core_type = #tpu.core_type<tc>, window_params = [{transform_indices = @transform_0, window_bounds = array<i64: 1, 8, 256>}, {transform_indices = @transform_1, window_bounds = array<i64: 1, 8, 256>}, {transform_indices = @transform_2, window_bounds = array<i64: 1, 8, 256>}, {transform_indices = @transform_3, window_bounds = array<i64: 1, 4, 256>}, {pipeline_mode = #tpu.pipeline_mode<synchronous>, transform_indices = @transform_4, window_bounds = array<i64: 4, 8>}, {pipeline_mode = #tpu.pipeline_mode<synchronous>, transform_indices = @transform_5, window_bounds = array<i64: 4, 1>}, {transform_indices = @transform_6, window_bounds = array<i64: 1, 4, 256>}]} {
    %c0_i32 = arith.constant 0 : i32
    %0 = arith.cmpi eq, %arg2, %c0_i32 : i32
    %1 = arith.extui %0 : i1 to i32
    %c0_i32_0 = arith.constant 0 : i32
    %2 = arith.cmpi ne, %1, %c0_i32_0 : i32
    scf.if %2 {
      %cst_26 = arith.constant 0xFF800000 : f32
      %36 = vector.broadcast %cst_26 : f32 to vector<1x256xf32>
      %c0_27 = arith.constant 0 : index
      %c0_28 = arith.constant 0 : index
      %37 = vector.load %arg11[%c0_27, %c0_28] : memref<1x256xf32, #tpu.memory_space<vmem>>, vector<1x256xf32>
      tpu.vector_store %arg11[%c0_27, %c0_28], %36 {strides = array<i32>} : memref<1x256xf32, #tpu.memory_space<vmem>>, vector<1x256xf32>,
      %cst_29 = arith.constant 0.000000e+00 : f32
      %38 = vector.broadcast %cst_29 : f32 to vector<1x256xf32>
      %c0_30 = arith.constant 0 : index
      %c0_31 = arith.constant 0 : index
      %39 = vector.load %arg12[%c0_30, %c0_31] : memref<1x256xf32, #tpu.memory_space<vmem>>, vector<1x256xf32>
      tpu.vector_store %arg12[%c0_30, %c0_31], %38 {strides = array<i32>} : memref<1x256xf32, #tpu.memory_space<vmem>>, vector<1x256xf32>,
      %cst_32 = arith.constant 0.000000e+00 : f32
      %40 = vector.broadcast %cst_32 : f32 to vector<8x256xf32>
      %c0_33 = arith.constant 0 : index
      %c0_34 = arith.constant 0 : index
      %41 = vector.load %arg10[%c0_33, %c0_34] : memref<8x256xf32, #tpu.memory_space<vmem>>, vector<8x256xf32>
      tpu.vector_store %arg10[%c0_33, %c0_34], %40 {strides = array<i32>} : memref<8x256xf32, #tpu.memory_space<vmem>>, vector<8x256xf32>,
    } else {
    }
    %c0 = arith.constant 0 : index
    %c0_1 = arith.constant 0 : index
    %c0_2 = arith.constant 0 : index
    %3 = vector.load %arg4[%c0, %c0_1, %c0_2] : memref<1x8x256xbf16, #tpu.memory_space<vmem>>, vector<1x8x256xbf16>
    %4 = vector.shape_cast %3 : vector<1x8x256xbf16> to vector<8x256xbf16>
    %c0_3 = arith.constant 0 : index
    %c0_4 = arith.constant 0 : index
    %c0_5 = arith.constant 0 : index
    %5 = vector.load %arg5[%c0_3, %c0_4, %c0_5] : memref<1x8x256xbf16, #tpu.memory_space<vmem>>, vector<1x8x256xbf16>
    %6 = vector.shape_cast %5 : vector<1x8x256xbf16> to vector<8x256xbf16>
    %c0_6 = arith.constant 0 : index
    %c0_7 = arith.constant 0 : index
    %c0_8 = arith.constant 0 : index
    %7 = vector.load %arg3[%c0_6, %c0_7, %c0_8] : memref<1x8x256xbf16, #tpu.memory_space<vmem>>, vector<1x8x256xbf16>
    %8 = vector.shape_cast %7 : vector<1x8x256xbf16> to vector<8x256xbf16>
    %cst = arith.constant dense<0.000000e+00> : vector<256x256xf32>
    %9 = tpu.matmul %6, %4, %cst {dimension_numbers = #tpu.dot_dimension_numbers<[0], [0], [1], [1], [0, 1, 1, 1], [], []>} : vector<8x256xbf16>, vector<8x256xbf16>, vector<256x256xf32> -> vector<256x256xf32>
    %c0_9 = arith.constant 0 : index
    %c0_10 = arith.constant 0 : index
    %10 = vector.load %arg11[%c0_9, %c0_10] : memref<1x256xf32, #tpu.memory_space<vmem>>, vector<1x256xf32>
    %cst_11 = arith.constant dense<0xFF800000> : vector<256xf32>
    %11 = vector.multi_reduction <maximumf>, %9, %cst_11 [0] : vector<256x256xf32> to vector<256xf32>
    %12 = vector.shape_cast %11 : vector<256xf32> to vector<1x256xf32>
    %13 = arith.maximumf %10, %12 : vector<1x256xf32>
    %14 = arith.subf %10, %13 : vector<1x256xf32>
    %15 = math.exp %14 : vector<1x256xf32>
    %16 = vector.broadcast %13 : vector<1x256xf32> to vector<256x256xf32>
    %17 = arith.subf %9, %16 : vector<256x256xf32>
    %18 = math.exp %17 : vector<256x256xf32>
    %c0_12 = arith.constant 0 : index
    %c0_13 = arith.constant 0 : index
    %19 = vector.load %arg12[%c0_12, %c0_13] : memref<1x256xf32, #tpu.memory_space<vmem>>, vector<1x256xf32>
    %20 = arith.mulf %15, %19 : vector<1x256xf32>
    %cst_14 = arith.constant dense<0.000000e+00> : vector<256xf32>
    %21 = vector.multi_reduction <add>, %18, %cst_14 [0] : vector<256x256xf32> to vector<256xf32>
    %22 = vector.shape_cast %21 : vector<256xf32> to vector<1x256xf32>
    %23 = arith.addf %20, %22 : vector<1x256xf32>
    %c0_15 = arith.constant 0 : index
    %c0_16 = arith.constant 0 : index
    %24 = vector.load %arg12[%c0_15, %c0_16] : memref<1x256xf32, #tpu.memory_space<vmem>>, vector<1x256xf32>
    tpu.vector_store %arg12[%c0_15, %c0_16], %23 {strides = array<i32>} : memref<1x256xf32, #tpu.memory_space<vmem>>, vector<1x256xf32>,
    %c0_17 = arith.constant 0 : index
    %c0_18 = arith.constant 0 : index
    %25 = vector.load %arg10[%c0_17, %c0_18] : memref<8x256xf32, #tpu.memory_space<vmem>>, vector<8x256xf32>
    %26 = vector.broadcast %15 : vector<1x256xf32> to vector<8x256xf32>
    %27 = arith.mulf %26, %25 : vector<8x256xf32>
    %28 = arith.truncf %18 : vector<256x256xf32> to vector<256x256xbf16>
    %cst_19 = arith.constant dense<0.000000e+00> : vector<8x256xf32>
    %29 = tpu.matmul %8, %28, %cst_19 {dimension_numbers = #tpu.dot_dimension_numbers<[1], [0], [0], [1], [0, 0, 1, 1], [], []>} : vector<8x256xbf16>, vector<256x256xbf16>, vector<8x256xf32> -> vector<8x256xf32>
    %30 = arith.addf %27, %29 : vector<8x256xf32>
    %c0_20 = arith.constant 0 : index
    %c0_21 = arith.constant 0 : index
    %31 = vector.load %arg10[%c0_20, %c0_21] : memref<8x256xf32, #tpu.memory_space<vmem>>, vector<8x256xf32>
    tpu.vector_store %arg10[%c0_20, %c0_21], %30 {strides = array<i32>} : memref<8x256xf32, #tpu.memory_space<vmem>>, vector<8x256xf32>,
    %c0_22 = arith.constant 0 : index
    %c0_23 = arith.constant 0 : index
    %32 = vector.load %arg11[%c0_22, %c0_23] : memref<1x256xf32, #tpu.memory_space<vmem>>, vector<1x256xf32>
    tpu.vector_store %arg11[%c0_22, %c0_23], %13 {strides = array<i32>} : memref<1x256xf32, #tpu.memory_space<vmem>>, vector<1x256xf32>,
    %c0_i32_24 = arith.constant 0 : i32
    %33 = arith.cmpi eq, %arg2, %c0_i32_24 : i32
    %34 = arith.extui %33 : i1 to i32
    %c0_i32_25 = arith.constant 0 : i32
    %35 = arith.cmpi ne, %34, %c0_i32_25 : i32
    scf.if %35 {
      %c0_26 = arith.constant 0 : index
      %c0_27 = arith.constant 0 : index
      %36 = vector.load %arg12[%c0_26, %c0_27] : memref<1x256xf32, #tpu.memory_space<vmem>>, vector<1x256xf32>
      %37 = tpu.reciprocal %36 {approx = true} : vector<1x256xf32> -> vector<1x256xf32>
      %c0_28 = arith.constant 0 : index
      %c0_29 = arith.constant 0 : index
      %38 = vector.load %arg10[%c0_28, %c0_29] : memref<8x256xf32, #tpu.memory_space<vmem>>, vector<8x256xf32>
      %39 = vector.broadcast %37 : vector<1x256xf32> to vector<8x256xf32>
      %40 = arith.mulf %38, %39 : vector<8x256xf32>
      %41 = arith.truncf %40 : vector<8x256xf32> to vector<8x256xbf16>
      %c0_30 = arith.constant 0 : index
      %c0_31 = arith.constant 0 : index
      %42 = vector.load %arg7[%c0_30, %c0_31] : memref<4x8xbf16, #tpu.memory_space<vmem>>, vector<4x8xbf16>
      %cst_32 = arith.constant dense<0.000000e+00> : vector<4x256xf32>
      %43 = tpu.matmul %42, %41, %cst_32 {dimension_numbers = #tpu.dot_dimension_numbers<[1], [0], [0], [1], [0, 0, 1, 1], [], []>} : vector<4x8xbf16>, vector<8x256xbf16>, vector<4x256xf32> -> vector<4x256xf32>
      %c0_33 = arith.constant 0 : index
      %c0_34 = arith.constant 0 : index
      %44 = vector.load %arg8[%c0_33, %c0_34] : memref<4x1xf32, #tpu.memory_space<vmem>>, vector<4x1xf32>
      %45 = vector.broadcast %44 : vector<4x1xf32> to vector<4x256xf32>
      %46 = arith.addf %43, %45 : vector<4x256xf32>
      %c0_35 = arith.constant 0 : index
      %c0_36 = arith.constant 0 : index
      %c0_37 = arith.constant 0 : index
      %47 = vector.load %arg6[%c0_35, %c0_36, %c0_37] : memref<1x4x256xf32, #tpu.memory_space<vmem>>, vector<1x4x256xf32>
      %48 = vector.shape_cast %47 : vector<1x4x256xf32> to vector<4x256xf32>
      %49 = arith.addf %48, %46 : vector<4x256xf32>
      %c0_38 = arith.constant 0 : index
      %c0_39 = arith.constant 0 : index
      %c0_40 = arith.constant 0 : index
      %50 = vector.load %arg9[%c0_38, %c0_39, %c0_40] : memref<1x4x256xf32, #tpu.memory_space<vmem>>, vector<1x4x256xf32>
      %51 = vector.shape_cast %50 : vector<1x4x256xf32> to vector<4x256xf32>
      %52 = vector.shape_cast %49 : vector<4x256xf32> to vector<1x4x256xf32>
      tpu.vector_store %arg9[%c0_38, %c0_39, %c0_40], %52 {strides = array<i32>} : memref<1x4x256xf32, #tpu.memory_space<vmem>>, vector<1x4x256xf32>,
    } else {
    }
    return
  }
  func.func @transform_0(%arg0: i32, %arg1: i32, %arg2: i32) -> (i32, i32, i32) {
    %c0_i32 = arith.constant 0 : i32
    %c0_i32_0 = arith.constant 0 : i32
    return %arg0, %c0_i32, %arg2 : i32, i32, i32
  }
  func.func @transform_1(%arg0: i32, %arg1: i32, %arg2: i32) -> (i32, i32, i32) {
    %c0_i32 = arith.constant 0 : i32
    %c0_i32_0 = arith.constant 0 : i32
    return %arg0, %c0_i32, %arg1 : i32, i32, i32
  }
  func.func @transform_2(%arg0: i32, %arg1: i32, %arg2: i32) -> (i32, i32, i32) {
    %c0_i32 = arith.constant 0 : i32
    %c0_i32_0 = arith.constant 0 : i32
    return %arg0, %c0_i32, %arg2 : i32, i32, i32
  }
  func.func @transform_3(%arg0: i32, %arg1: i32, %arg2: i32) -> (i32, i32, i32) {
    %c0_i32 = arith.constant 0 : i32
    %c0_i32_0 = arith.constant 0 : i32
    return %arg0, %c0_i32, %arg1 : i32, i32, i32
  }
  func.func @transform_4(%arg0: i32, %arg1: i32, %arg2: i32) -> (i32, i32) {
    %c0_i32 = arith.constant 0 : i32
    %c0_i32_0 = arith.constant 0 : i32
    %c0_i32_1 = arith.constant 0 : i32
    return %c0_i32, %c0_i32_0 : i32, i32
  }
  func.func @transform_5(%arg0: i32, %arg1: i32, %arg2: i32) -> (i32, i32) {
    %c0_i32 = arith.constant 0 : i32
    %c0_i32_0 = arith.constant 0 : i32
    %c0_i32_1 = arith.constant 0 : i32
    return %c0_i32, %c0_i32_0 : i32, i32
  }
  func.func @transform_6(%arg0: i32, %arg1: i32, %arg2: i32) -> (i32, i32, i32) {
    %c0_i32 = arith.constant 0 : i32
    %c0_i32_0 = arith.constant 0 : i32
    return %arg0, %c0_i32, %arg1 : i32, i32, i32
  }
}

</mosaic_0001>

<bundles_post_ra>
// kernel: tpu_custom_call.1
= control target key start
LH: loop header
LB: loop body
LE: loop exit
PB: predicated region body
PF: predicated region fallthrough
CT: control target
= control target key end

     0   :  { %s2975_s0 = inlined_call_operand.hbm [shape: bf16[2,8,256], index: 0, kind: input, shape index: {}]   ;;  %s2976_s1 = inlined_call_operand.hbm [shape: bf16[2,8,256], index: 1, kind: input, shape index: {}]   ;;  %s2977_s2 = inlined_call_operand.hbm [shape: bf16[2,8,256], index: 2, kind: input, shape index: {}]   ;;  %s2978_s3 = inlined_call_operand.hbm [shape: f32[2,4,256], index: 3, kind: input, shape index: {}]   ;;  %s2979_s4 = inlined_call_operand.vmem [shape: bf16[4,8], index: 4, kind: input, shape index: {}]   ;;  %s2980_s5 = inlined_call_operand.vmem [shape: f32[4,1], index: 5, kind: input, shape index: {}]   ;;  %s2981_s6 = inlined_call_operand.hbm [shape: f32[2,4,256], index: 6, kind: output, shape index: {}]  }
   0x1   :  { %3053 = sst [smem:[#allocation56_spill]] %s2976_s1 }
   0x2   :  { %11 = vsyncpa [#allocation6], 0 }
   0x3   :  { %13 = vsyncpa [#allocation6 + $0x1], 0 }
   0x4   :  { %14 = vsyncpa [#allocation9], 0 }
   0x5   :  { %16 = vsyncpa [#allocation9 + $0x1], 0 }
   0x6   :  { %17 = vsyncpa [#allocation12], 0 }
   0x7   :  { %19 = vsyncpa [#allocation12 + $0x1], 0 }
   0x8   :  { %20 = vsyncpa [#allocation7], 0 }
   0x9   :  { %22 = vsyncpa [#allocation7 + $0x1], 0  ;;  %s2029_s21 = smov 0   ;;  %s2031_s22 = smov 0  }
   0xa   :  { %s2033_s23 = smov 0   ;;  %s2035_s24 = smov 0  }
   0xb   :  { %s2037_s25 = smov 0   ;;  %s2039_s26 = smov 0  }
   0xc LB: > { %3054 = sst [smem:[#allocation18_spill]] %s1963_s21  ;;  %s2060_s27 = sadd.s32 4294967295, %s1983_s26   ;;  %s1983_s26 = sphi %s2039_s26, %s28_s26   ;;  %s1979_s25 = sphi %s2037_s25, %s3227_s25   ;;  %s1975_s24 = sphi %s2035_s24, %s3226_s24   ;;  %s1971_s23 = sphi %s2033_s23, %s3225_s23   ;;  %s1967_s22 = sphi %s2031_s22, %s3229_s22   ;;  %s1963_s21 = sphi %s2029_s21, %s3228_s21  }
   0xd   : > { %3055 = sst [smem:[#allocation19_spill]] %s1971_s23  ;;  %s1496_s28 = sadd.s32 4294967294, %s1983_s26  }
   0xe   : > { %3056 = sst [smem:[#allocation20_spill]] %s1979_s25  ;;  %s47_s29 = sadd.s32 1, %s1979_s25 }
   0xf   : > { %3057 = sst [smem:[#allocation21_spill]] %s1983_s26  ;;  %s56_s30 = sadd.s32 1, %s1971_s23 }
  0x10   : > { %p49_p0 = scmp.ge.s32.totalorder %s47_s29, 2  ;;  %p63_p1 = scmp.ne.s32.totalorder %s1971_s23, %s1967_s22 }
  0x11   : > { %p64_p2 = scmp.eq.s32.totalorder %s1983_s26, 0  ;;  %p69_p3 = scmp.ne.s32.totalorder %s1967_s22, %s1963_s21 }
  0x12   : > { %s3231_s29 = smov (%p49_p0, %s47_s29), 0  ;;  %p70_p5 = scmp.eq.s32.totalorder %s2060_s27, 0 }
  0x13   : > { %3058 = sst [smem:[#allocation22_spill]] %s3231_s29  ;;  %p2072_p4 = por %p64_p2, %p63_p1 }
  0x14   : > { %s51_s8 = ssub.s32 %s1979_s25, %s3231_s29  ;;  %p221_p6 = scmp.eq.s32.totalorder %s2060_s27, 1 }
  0x15   : > { %p54_p7 = scmp.eq.s32.totalorder %s51_s8, 0  ;;  %p2080_p8 = por %p70_p5, %p69_p3 }
  0x16   : > { %p2084_p9 = por %p221_p6, %p63_p1  ;;  %p227_p10 = scmp.eq.s32.totalorder %s1496_s28, 1 }
  0x17   : > { %s3060_s9 = scalar_select %p2080_p8, 1, 0 }
  0x18   : > { %s3061_s10 = scalar_select %p2084_p9, 1, 0 }
  0x19   : > { %s2089_s11 = scalar_select %p54_p7, %s1971_s23, %s56_s30  }
  0x1a   : > { %p2091_p11 = por %p227_p10, %p69_p3  ;;  %p1579_p13 = scmp.lt.s32.totalorder %s1983_s26, 2 }
  0x1b   : > { %3062 = sst [smem:[#allocation23_spill]] %s2089_s11  ;;  %s2098_s13 = sand.u32 1, %s1971_s23  }
  0x1c   : > { %s3063_s12 = scalar_select %p2091_p11, 1, 0 }
  0x1d   : > { %s2101_s14 = sshll.u32 %s2098_s13, 3  ;;  %s2104_s15 = sshll.u32 %s1979_s25, 7 }
  0x1e   : > { %3064 = sst [smem:[#allocation24_spill]] %s3063_s12  ;;  %p2108_p0 = pnand %p1579_p13, %p2072_p4 }
  0x1f   : > { %s274_s17 = sand.u32 1, %s1983_s26   ;;  %s3066_s1 = sld [smem:[#allocation56_spill]] }
  0x20   : > { %s3065_s16 = scalar_select %p2108_p0, 1, 0 }
  0x21   : > { %s278_s28 = scalar_lea.vmem [#allocation8], %s2101_s14  ;;  %s2124_s7 = scalar_lea.sflag [#allocation9], %s274_s17 }
  0x22   : > { %s288_s30 = sshll.u32 %s278_s28, 4  ;;  %p2130_p4 = pneg %p2108_p0  ;;  %s2121_s30 = int_to_ptr.vmem [resolvable:$true] %s288_s30 }
  0x25   : > { %s2117_s20 = scalar_lea.hbm %s3066_s1, %s2104_s15  ;;  %s1778_s28 = scalar_lea.hbm %s3066_s1, 256 }
  0x26   : > { %s1773_s8 = scalar_lea.hbm %s2117_s20, 128  ;;  %p1779_p7 = scmp.lt.u32.totalorder %s2117_s20, %s3066_s1 }
  0x27   : > { %p1774_p3 = scmp.ne.s32.totalorder %s2117_s20, %s1773_s8  ;;  %p1780_p10 = scmp.lt.u32.totalorder %s1778_s28, %s1773_s8 }
  0x28   : > { %p1782_p12 = scmp.lt.u32.totalorder %s1773_s8, %s2117_s20 }
  0x29   : > { %p1776_p5 = pnand %p2130_p4, %p1774_p3  ;;  %p1781_p13 = por %p1780_p10, %p1779_p7 }
  0x2b   : > { %p1777_p6 = pneg %p1776_p5  ;;  %p1783_p1 = por %p1782_p12, %p1781_p13 }
  0x2d   : > { %p1784_p2 = pnand %p1783_p1, %p1777_p6 }
  0x2f   : > { %1787 = shalt.err (!%p1784_p2)
}
  0x30   : > { %s1788_s17 = scalar_lea.vmem %s2121_s30, 128  ;;  %s1985_s18 = smov [#allocation8]  }
  0x31   : > { %p1789_p3 = scmp.ne.s32.totalorder %s2121_s30, %s1788_s17  ;;  %s1793_s19 = sshll.u32 %s1985_s18, 4  ;;  %s1794_s19 = int_to_ptr.vmem [resolvable:$false] %s1793_s19 }
  0x32   : > { %s1795_s25 = scalar_lea.vmem %s1794_s19, 256  ;;  %p1796_p9 = scmp.lt.s32.totalorder %s2121_s30, %s1794_s19 }
  0x33   : > { %p1791_p5 = pnand %p1789_p3, %p2130_p4  ;;  %p1797_p8 = scmp.lt.s32.totalorder %s1795_s25, %s1788_s17 }
  0x35   : > { %p1792_p11 = pneg %p1791_p5  ;;  %p1798_p7 = por %p1797_p8, %p1796_p9 }
  0x37   : > { %p1799_p10 = pnand %p1798_p7, %p1792_p11 }
  0x39   : > { %1802 = shalt.err (!%p1799_p10)
}
  0x3a   : > { %1568 = dma.hbm_to_vmem [thread:$0]  (!%p2108_p0), %s2117_s20, 128, %s2121_s30, %s2124_s7  }
  0x3b   : > { %p3068_p12 = scmp.lt.s32.totalorder %s1983_s26, 3  ;;  %p3069_p1 = scmp.ge.s32.totalorder %s1983_s26, 1 }
  0x3c   : > { %s2166_s17 = scalar_lea.hbm %s2975_s0, %s2104_s15  ;;  %s257_s18 = scalar_lea.vmem [#allocation5], %s2101_s14 }
  0x3d   : > { %p2158_p2 = pnand %p3069_p1, %p3068_p12  ;;  %s267_s19 = sshll.u32 %s257_s18, 4  ;;  %s2169_s19 = int_to_ptr.vmem [resolvable:$true] %s267_s19 }
  0x3e   : > { %s2175_s25 = scalar_lea.hbm %s2977_s2, %s2104_s15  ;;  %s254_s1 = scalar_lea.sflag [#allocation6], %s2098_s13 }
  0x3f   : > { %s3070_s11 = scalar_select %p2158_p2, 1, 0 }
  0x40   : > { %s1803_s23 = scalar_lea.hbm %s2166_s17, 128  ;;  %s1808_s26 = scalar_lea.hbm %s2975_s0, 256 }
  0x41   : > { %p1804_p8 = scmp.ne.s32.totalorder %s2166_s17, %s1803_s23  ;;  %p1809_p6 = scmp.lt.u32.totalorder %s2166_s17, %s2975_s0 }
  0x42   : > { %p1810_p13 = scmp.lt.u32.totalorder %s1808_s26, %s1803_s23  ;;  %p1812_p5 = scmp.lt.u32.totalorder %s1803_s23, %s2166_s17 }
  0x43   : > { %p1806_p9 = pnand %p1804_p8, %p2130_p4 }
  0x44   : > { %p1811_p3 = por %p1810_p13, %p1809_p6 }
  0x45   : > { %p1807_p11 = pneg %p1806_p9 }
  0x46   : > { %p1813_p7 = por %p1812_p5, %p1811_p3 }
  0x48   : > { %p1814_p10 = pnand %p1813_p7, %p1807_p11 }
  0x4a   : > { %1817 = shalt.err (!%p1814_p10)
}
  0x4b   : > { %s1818_s18 = scalar_lea.vmem %s2169_s19, 128  ;;  %s1986_s20 = smov [#allocation5]  }
  0x4c   : > { %p1819_p12 = scmp.ne.s32.totalorder %s2169_s19, %s1818_s18  ;;  %s1823_s30 = sshll.u32 %s1986_s20, 4  ;;  %s1824_s30 = int_to_ptr.vmem [resolvable:$false] %s1823_s30 }
  0x4d   : > { %s1825_s21 = scalar_lea.vmem %s1824_s30, 256  ;;  %p1826_p9 = scmp.lt.s32.totalorder %s2169_s19, %s1824_s30 }
  0x4e   : > { %p1821_p1 = pnand %p1819_p12, %p2130_p4  ;;  %p1827_p2 = scmp.lt.s32.totalorder %s1825_s21, %s1818_s18 }
  0x50   : > { %p1822_p8 = pneg %p1821_p1  ;;  %p1828_p6 = por %p1827_p2, %p1826_p9 }
  0x52   : > { %p1829_p13 = pnand %p1828_p6, %p1822_p8 }
  0x54   : > { %1832 = shalt.err (!%p1829_p13)
}
  0x55   : > { %1565 = dma.hbm_to_vmem [thread:$0]  (!%p2108_p0), %s2166_s17, 128, %s2169_s19, %s254_s1  }
  0x56   : > { %s299_s23 = scalar_lea.vmem [#allocation10], %s2101_s14  ;;  %s1833_s12 = scalar_lea.hbm %s2175_s25, 128 }
  0x57   : > { %s309_s26 = sshll.u32 %s299_s23, 4  ;;  %p1834_p11 = scmp.ne.s32.totalorder %s2175_s25, %s1833_s12  ;;  %s310_s26 = int_to_ptr.vmem [resolvable:$true] %s309_s26 }
  0x58   : > { %s1838_s18 = scalar_lea.hbm %s2977_s2, 256  ;;  %p1839_p5 = scmp.lt.u32.totalorder %s2175_s25, %s2977_s2 }
  0x59   : > { %p1836_p2 = pnand %p1834_p11, %p2130_p4  ;;  %p1840_p7 = scmp.lt.u32.totalorder %s1838_s18, %s1833_s12 }
  0x5a   : > { %p1842_p12 = scmp.lt.u32.totalorder %s1833_s12, %s2175_s25 }
  0x5b   : > { %p1837_p3 = pneg %p1836_p2  ;;  %p1841_p10 = por %p1840_p7, %p1839_p5 }
  0x5d   : > { %p1843_p1 = por %p1842_p12, %p1841_p10 }
  0x5f   : > { %p1844_p8 = pnand %p1843_p1, %p1837_p3 }
  0x61   : > { %1847 = shalt.err (!%p1844_p8)
}
  0x62   : > { %s1848_s1 = scalar_lea.vmem %s310_s26, 128  ;;  %s1987_s17 = smov [#allocation10]  }
  0x63   : > { %p1849_p9 = scmp.ne.s32.totalorder %s310_s26, %s1848_s1  ;;  %s1853_s19 = sshll.u32 %s1987_s17, 4  ;;  %s1854_s19 = int_to_ptr.vmem [resolvable:$false] %s1853_s19 }
  0x64   : > { %s1855_s21 = scalar_lea.vmem %s1854_s19, 256  ;;  %p1856_p11 = scmp.lt.s32.totalorder %s310_s26, %s1854_s19 }
  0x65   : > { %p1851_p6 = pnand %p1849_p9, %p2130_p4  ;;  %p1857_p2 = scmp.lt.s32.totalorder %s1855_s21, %s1848_s1 }
  0x67   : > { %p1852_p13 = pneg %p1851_p6  ;;  %p1858_p0 = por %p1857_p2, %p1856_p11 }
  0x69   : > { %p1859_p5 = pnand %p1858_p0, %p1852_p13 }
  0x6b   : > { %1862 = shalt.err (!%p1859_p5)
}
  0x6c   : > { %p3071_p7 = scmp.ne.s32.totalorder %s3065_s16, 0  ;;  %s2222_s8 = scalar_lea.hbm %s2978_s3, %s2104_s15 }
  0x6d   : > { %s320_s28 = scalar_lea.vmem [#allocation11], %s2101_s14  ;;  %s317_s20 = scalar_lea.sflag [#allocation12], %s2098_s13 }
  0x6e   : > { %1571 = dma.hbm_to_vmem [thread:$0]  (!%p3071_p7), %s2175_s25, 128, %s310_s26, %s2124_s7  }
  0x6f   : > { %s330_s18 = sshll.u32 %s320_s28, 4  ;;  %s1863_s30 = scalar_lea.hbm %s2222_s8, 128  ;;  %s331_s18 = int_to_ptr.vmem [resolvable:$true] %s330_s18 }
  0x70   : > { %p1864_p0 = scmp.ne.s32.totalorder %s2222_s8, %s1863_s30  ;;  %s1868_s25 = scalar_lea.hbm %s2978_s3, 256 }
  0x71   : > { %p1869_p12 = scmp.lt.u32.totalorder %s2222_s8, %s2978_s3  ;;  %p1870_p1 = scmp.lt.u32.totalorder %s1868_s25, %s1863_s30 }
  0x72   : > { %p1866_p3 = pnand %p1864_p0, %p2130_p4  ;;  %p1872_p9 = scmp.lt.u32.totalorder %s1863_s30, %s2222_s8 }
  0x73   : > { %p1871_p8 = por %p1870_p1, %p1869_p12 }
  0x74   : > { %p1867_p10 = pneg %p1866_p3 }
  0x75   : > { %p1873_p6 = por %p1872_p9, %p1871_p8 }
  0x77   : > { %p1874_p13 = pnand %p1873_p6, %p1867_p10 }
  0x79   : > { %1877 = shalt.err (!%p1874_p13)
}
  0x7a   : > { %s1878_s13 = scalar_lea.vmem %s331_s18, 128  ;;  %s1988_s14 = smov [#allocation11]  }
  0x7b   : > { %p1879_p11 = scmp.ne.s32.totalorder %s331_s18, %s1878_s13  ;;  %s1883_s17 = sshll.u32 %s1988_s14, 4  ;;  %s1884_s17 = int_to_ptr.vmem [resolvable:$false] %s1883_s17 }
  0x7c   : > { %s1885_s19 = scalar_lea.vmem %s1884_s17, 256  ;;  %p1886_p0 = scmp.lt.s32.totalorder %s331_s18, %s1884_s17 }
  0x7d   : > { %p1881_p2 = pnand %p1879_p11, %p2130_p4  ;;  %p1887_p3 = scmp.lt.s32.totalorder %s1885_s19, %s1878_s13 }
  0x7f   : > { %p1882_p5 = pneg %p1881_p2  ;;  %p1888_p7 = por %p1887_p3, %p1886_p0 }
  0x81   : > { %p1889_p1 = pnand %p1888_p7, %p1882_p5 }
  0x83   : > { %1892 = shalt.err (!%p1889_p1)
}
  0x84   : > { %p3072_p12 = scmp.ne.s32.totalorder %s3065_s16, 0  ;;  %p3073_p10 = scmp.ne.s32.totalorder %s3070_s11, 0 }
  0x86   : > { %1574 = dma.hbm_to_vmem [thread:$0]  (!%p3072_p12), %s2222_s8, 128, %s331_s18, %s317_s20  }
  0x87   : > { %339 = sbr.rel (%p3073_p10) target bundleno = 1160 (0x488), region = 44 }
  0x8e   : > { %s2246_s29 = sand.u32 1, %s1967_s22   ;;  %p3074_p4 = scmp.ne.s32.totalorder %s3060_s9, 0 }
  0x8f   : > { %s2249_s21 = sshll.u32 %s2246_s29, 3  ;;  %s342_s23 = scalar_lea.sflag [#allocation6], %s2246_s29 }
  0x90   : > { %s345_s12 = scalar_lea.vmem [#allocation5], %s2249_s21 }
  0x91   : > { %1946 = dma.done.wait (%p3074_p4), %s342_s23, 128  }
  0x92   : > { %1948 = vsyncadd (%p3074_p4), %s342_s23, 4294967168  ;;  %s350_s16 = sand.u32 1, %s2060_s27   ;;  %s354_s8 = scalar_lea.vmem [#allocation8], %s2249_s21 }
  0x93   : > { %s351_s11 = scalar_lea.sflag [#allocation9], %s350_s16 }
  0x94   : > { %1950 = dma.done.wait (%p3074_p4), %s351_s11, 256  }
  0x95   : > { %1952 = vsyncadd (%p3074_p4), %s351_s11, 4294967040  ;;  %s363_s28 = scalar_lea.vmem [#allocation10], %s2249_s21  ;;  %s369_s18 = scalar_lea.sflag [#allocation12], %s2246_s29 }
  0x96   : > { %s372_s20 = scalar_lea.vmem [#allocation11], %s2249_s21 }
  0x97   : > { %1954 = dma.done.wait (%p3074_p4), %s369_s18, 128  }
  0x98   : > { %1956 = vsyncadd (%p3074_p4), %s369_s18, 4294967168  ;;  %v2993_v0 = vmov 0   ;;  %v435_v1 = vld [vmem:[%s363_s28] sm:$0xff]  ;;  %v434_v2 = vld [vmem:[%s354_s8] sm:$0xff]  ;;  %vm530_vm0 = vcmask 1043456   ;;  %vm481_vm1 = vcmask 64512   ;;  %v2994_v28 = vlaneseq }
  0x99   : > { %569 = vmatprep.mubr.bf16.mxu0 %v2993_v0  ;;  %1633 = vset.pattern.permute.xlu1 %v2993_v0  ;;  %v1517_v3 = vcombine.low %v435_v1, %v435_v1  ;;  %v1520_v4 = vcombine.high %v434_v2, %v434_v2  ;;  %v1519_v5 = vcombine.low %v434_v2, %v434_v2  ;;  %v3075_v32 = vmov 0  ;;  %s1551_s7 = sshll.u32 %s1975_s24, 7  ;;  %s415_s25 = scalar_lea.vmem [#allocation13], %s2249_s21 }
  0x9a   : > { %v1518_v7 = vcombine.high %v435_v1, %v435_v1  ;;  %vm2321_vm2 = vcmp.lt.s32.totalorder %v2994_v28, 256  ;;  %v1990_v35 = vmov -inf   ;;  %v1991_v36 = vmov 0.0   ;;  %s1333_s26 = sshll.u32 %s415_s25, 4  ;;  %s2926_s14 = scalar_lea.hbm %s2981_s6, %s1551_s7  ;;  %s2928_s26 = int_to_ptr.vmem [resolvable:$true] %s1333_s26 }
  0x9b   : > { %444 = vxpose.xlu0.c.b16.start.end [1/1] (short) %v1517_v3, 128  ;;  %1521 = vmatprep.subr.msk.bf16.mxu0 %vm530_vm0, %v1520_v4  ;;  %v532_v6 = vsel %vm530_vm0, %v1519_v5, 0  ;;  %v3076_v32 = vsel %vm2321_vm2, 4294967295, %v3075_v32  ;;  %430 = vst.msk [vmem:[#allocation3] sm:$0x3] %vm2321_vm2, %v1990_v35  ;;  %431 = vst.msk [vmem:[#allocation4] sm:$0x3] %vm2321_vm2, %v1991_v36 }
  0x9c   : > { %538 = vmatpush1.bf16.msra.mxu0 %v532_v6  ;;  %3077 = vst [vmem:[#allocation25_spill] sm:$0xff] %v3076_v32  ;;  %s1317_s17 = scalar_lea.sflag [#allocation7], %s2246_s29  ;;  %s1893_s19 = scalar_lea.vmem %s2928_s26, 128 }
  0x9d   : > { %p1894_p7 = scmp.ne.s32.totalorder %s2928_s26, %s1893_s19  ;;  %p3218_p8 = scmp.ne.s32.totalorder %s3061_s10, 0 }
  0x9e   : > { %s1993_s24 = smov [#allocation13]  }
  0x9f   : > { %p1895_p9 = pnand %p1894_p7, %p3218_p8  ;;  %s1897_s21 = sshll.u32 %s1993_s24, 4  ;;  %s1898_s21 = int_to_ptr.vmem [resolvable:$false] %s1897_s21 }
  0xa0   : > { %s1899_s23 = scalar_lea.vmem %s1898_s21, 256  ;;  %p1900_p13 = scmp.lt.s32.totalorder %s2928_s26, %s1898_s21 }
  0xa1   : > { %p1896_p6 = pneg %p1895_p9  ;;  %p1901_p11 = scmp.lt.s32.totalorder %s1899_s23, %s1893_s19 }
  0xa3   : > { %p1902_p2 = por %p1901_p11, %p1900_p13 }
  0xa5   : > { %p1903_p5 = pnand %p1902_p2, %p1896_p6 }
  0xb8   : > { %460 = vxpose.xlu0.c.b16.start.end [1/1] (short) %v1518_v7, 128 }
  0xc1   : > { %1634 = vset.pattern.permute.xlu0 %v2993_v0 }
 0x101   : > { %v452_v8 = vpop.trf.xlu0 }
 0x102   : > { %1522 = vmatmul.mubr.msk.bf16.vlgmr.msra.gmra.mrb[0].mxu0 %vm481_vm1, %v452_v8 }
 0x103   : > { %579 = vmatprep.mubr.bf16.mxu0 %v2993_v0 }
 0x105   : > { %v453_v9 = vpop.trf.xlu0 }
 0x109   : > { %v454_v10 = vpop.trf.xlu0 }
 0x10a   : > { %1523 = vmatmul.mubr.msk.bf16.gmra.mrb[4].mxu0 %vm481_vm1, %v453_v9 }
 0x10b   : > { %589 = vmatprep.mubr.bf16.mxu0 %v2993_v0 }
 0x10d   : > { %v455_v11 = vpop.trf.xlu0 }
 0x111   : > { %v456_v12 = vpop.trf.xlu0 }
 0x112   : > { %1524 = vmatmul.mubr.msk.bf16.gmra.mrb[8].mxu0 %vm481_vm1, %v454_v10 }
 0x113   : > { %599 = vmatprep.mubr.bf16.mxu0 %v2993_v0 }
 0x115   : > { %v457_v13 = vpop.trf.xlu0 }
 0x119   : > { %v458_v14 = vpop.trf.xlu0 }
 0x11a   : > { %1525 = vmatmul.mubr.msk.bf16.gmra.mrb[12].mxu0 %vm481_vm1, %v455_v11 }
 0x11b   : > { %609 = vmatprep.mubr.bf16.mxu0 %v2993_v0 }
 0x11d   : > { %v459_v15 = vpop.trf.xlu0 }
 0x121   : > { %v468_v16 = vpop.trf.xlu0 }
 0x122   : > { %1526 = vmatmul.mubr.msk.bf16.gmra.mrb[16].mxu0 %vm481_vm1, %v456_v12 }
 0x123   : > { %619 = vmatprep.mubr.bf16.mxu0 %v2993_v0 }
 0x125   : > { %v469_v17 = vpop.trf.xlu0 }
 0x129   : > { %v470_v18 = vpop.trf.xlu0 }
 0x12a   : > { %1527 = vmatmul.mubr.msk.bf16.gmra.mrb[20].mxu0 %vm481_vm1, %v457_v13 }
 0x12b   : > { %629 = vmatprep.mubr.bf16.mxu0 %v2993_v0 }
 0x12d   : > { %v471_v19 = vpop.trf.xlu0 }
 0x131   : > { %v472_v20 = vpop.trf.xlu0 }
 0x132   : > { %1528 = vmatmul.mubr.msk.bf16.gmra.mrb[24].mxu0 %vm481_vm1, %v458_v14 }
 0x133   : > { %639 = vmatprep.mubr.bf16.mxu0 %v2993_v0 }
 0x135   : > { %v473_v21 = vpop.trf.xlu0 }
 0x139   : > { %v474_v22 = vpop.trf.xlu0 }
 0x13a   : > { %1529 = vmatmul.mubr.msk.bf16.gmra.mrb[28].mxu0 %vm481_vm1, %v459_v15 }
 0x13b   : > { %649 = vmatprep.mubr.bf16.mxu0 %v2993_v0 }
 0x13d   : > { %v475_v23 = vpop.trf.xlu0 }
 0x142   : > { %1530 = vmatmul.mubr.msk.bf16.gmra.mrb[32].mxu0 %vm481_vm1, %v468_v16 }
 0x143   : > { %659 = vmatprep.mubr.bf16.mxu0 %v2993_v0 }
 0x14a   : > { %1531 = vmatmul.mubr.msk.bf16.gmra.mrb[36].mxu0 %vm481_vm1, %v469_v17 }
 0x14b   : > { %669 = vmatprep.mubr.bf16.mxu0 %v2993_v0 }
 0x152   : > { %1532 = vmatmul.mubr.msk.bf16.gmra.mrb[40].mxu0 %vm481_vm1, %v470_v18 }
 0x153   : > { %679 = vmatprep.mubr.bf16.mxu0 %v2993_v0 }
 0x15a   : > { %1533 = vmatmul.mubr.msk.bf16.gmra.mrb[44].mxu0 %vm481_vm1, %v471_v19 }
 0x15b   : > { %689 = vmatprep.mubr.bf16.mxu0 %v2993_v0 }
 0x162   : > { %1534 = vmatmul.mubr.msk.bf16.gmra.mrb[48].mxu0 %vm481_vm1, %v472_v20 }
 0x163   : > { %699 = vmatprep.mubr.bf16.mxu0 %v2993_v0 }
 0x16a   : > { %1535 = vmatmul.mubr.msk.bf16.gmra.mrb[52].mxu0 %vm481_vm1, %v473_v21 }
 0x16b   : > { %709 = vmatprep.mubr.bf16.mxu0 %v2993_v0 }
 0x172   : > { %1536 = vmatmul.mubr.msk.bf16.gmra.mrb[56].mxu0 %vm481_vm1, %v474_v22 }
 0x173   : > { %719 = vmatprep.mubr.bf16.mxu0 %v2993_v0 }
 0x17a   : > { %1537 = vmatmul.mubr.msk.bf16.gmra.mrb[60].mxu0 %vm481_vm1, %v475_v23 }
 0x1d5   : > { %v2306_v24 = vpop.f32.mrb[0].mxu0 }
 0x1d6   : > { %v2308_v25 = vpop.f32.mrb[1].mxu0 }
 0x1d7   : > { %v2310_v26 = vpop.f32.mrb[2].mxu0 }
 0x1d8   : > { %v2312_v27 = vpop.f32.mrb[3].mxu0 }
 0x1dd   : > { %v2314_v29 = vpop.f32.mrb[4].mxu0 }
 0x1de   : > { %v731_v30 = vmax.f32 %v2306_v24, %v2314_v29  ;;  %v2318_v31 = vpop.f32.mrb[5].mxu0 }
 0x1df   : > { %v768_v33 = vmax.f32 %v2308_v25, %v2318_v31  ;;  %v2327_v34 = vpop.f32.mrb[6].mxu0 }
 0x1e0   : > { %v732_v37 = vmax.f32 %v2310_v26, %v2327_v34  ;;  %v2335_v38 = vpop.f32.mrb[7].mxu0 }
 0x1e1   : > { %v769_v39 = vmax.f32 %v2312_v27, %v2335_v38 }
 0x1e5   : > { %v2339_v40 = vpop.f32.mrb[8].mxu0 }
 0x1e6   : > { %v733_v41 = vmax.f32 %v731_v30, %v2339_v40  ;;  %v2342_v42 = vpop.f32.mrb[9].mxu0 }
 0x1e7   : > { %v770_v43 = vmax.f32 %v768_v33, %v2342_v42  ;;  %v2345_v44 = vpop.f32.mrb[10].mxu0 }
 0x1e8   : > { %v734_v45 = vmax.f32 %v732_v37, %v2345_v44  ;;  %v2348_v46 = vpop.f32.mrb[11].mxu0 }
 0x1e9   : > { %v771_v47 = vmax.f32 %v769_v39, %v2348_v46 }
 0x1ed   : > { %v2351_v48 = vpop.f32.mrb[12].mxu0 }
 0x1ee   : > { %v735_v49 = vmax.f32 %v733_v41, %v2351_v48  ;;  %v2354_v50 = vpop.f32.mrb[13].mxu0 }
 0x1ef   : > { %v772_v51 = vmax.f32 %v770_v43, %v2354_v50  ;;  %v2357_v52 = vpop.f32.mrb[14].mxu0 }
 0x1f0   : > { %v736_v53 = vmax.f32 %v734_v45, %v2357_v52  ;;  %v2360_v54 = vpop.f32.mrb[15].mxu0 }
 0x1f1   : > { %v773_v55 = vmax.f32 %v771_v47, %v2360_v54 }
 0x1f5   : > { %v2363_v56 = vpop.f32.mrb[16].mxu0 }
 0x1f6   : > { %v737_v57 = vmax.f32 %v735_v49, %v2363_v56  ;;  %v2366_v58 = vpop.f32.mrb[17].mxu0 }
 0x1f7   : > { %v774_v59 = vmax.f32 %v772_v51, %v2366_v58  ;;  %v2369_v60 = vpop.f32.mrb[18].mxu0 }
 0x1f8   : > { %v738_v61 = vmax.f32 %v736_v53, %v2369_v60  ;;  %v2372_v62 = vpop.f32.mrb[19].mxu0 }
 0x1f9   : > { %v775_v63 = vmax.f32 %v773_v55, %v2372_v62 }
 0x1fd   : > { %v2375_v1 = vpop.f32.mrb[20].mxu0 }
 0x1fe   : > { %v739_v2 = vmax.f32 %v737_v57, %v2375_v1  ;;  %v2378_v3 = vpop.f32.mrb[21].mxu0 }
 0x1ff   : > { %v776_v4 = vmax.f32 %v774_v59, %v2378_v3  ;;  %v2381_v5 = vpop.f32.mrb[22].mxu0 }
 0x200   : > { %v740_v6 = vmax.f32 %v738_v61, %v2381_v5  ;;  %v2384_v7 = vpop.f32.mrb[23].mxu0 }
 0x201   : > { %v777_v8 = vmax.f32 %v775_v63, %v2384_v7 }
 0x205   : > { %v2387_v9 = vpop.f32.mrb[24].mxu0 }
 0x206   : > { %v741_v10 = vmax.f32 %v739_v2, %v2387_v9  ;;  %v2390_v11 = vpop.f32.mrb[25].mxu0 }
 0x207   : > { %v778_v12 = vmax.f32 %v776_v4, %v2390_v11  ;;  %v2393_v13 = vpop.f32.mrb[26].mxu0 }
 0x208   : > { %v742_v14 = vmax.f32 %v740_v6, %v2393_v13  ;;  %v2396_v15 = vpop.f32.mrb[27].mxu0 }
 0x209   : > { %v779_v16 = vmax.f32 %v777_v8, %v2396_v15 }
 0x20d   : > { %v2399_v17 = vpop.f32.mrb[28].mxu0 }
 0x20e   : > { %v743_v18 = vmax.f32 %v741_v10, %v2399_v17  ;;  %v2402_v19 = vpop.f32.mrb[29].mxu0 }
 0x20f   : > { %v780_v20 = vmax.f32 %v778_v12, %v2402_v19  ;;  %v2405_v21 = vpop.f32.mrb[30].mxu0 }
 0x210   : > { %v744_v22 = vmax.f32 %v742_v14, %v2405_v21  ;;  %v2408_v23 = vpop.f32.mrb[31].mxu0 }
 0x211   : > { %v781_v30 = vmax.f32 %v779_v16, %v2408_v23 }
 0x215   : > { %v2411_v33 = vpop.f32.mrb[32].mxu0 }
 0x216   : > { %v745_v35 = vmax.f32 %v743_v18, %v2411_v33  ;;  %v2414_v36 = vpop.f32.mrb[33].mxu0 }
 0x217   : > { %v782_v37 = vmax.f32 %v780_v20, %v2414_v36  ;;  %v2417_v39 = vpop.f32.mrb[34].mxu0 }
 0x218   : > { %v746_v41 = vmax.f32 %v744_v22, %v2417_v39  ;;  %v2420_v43 = vpop.f32.mrb[35].mxu0 }
 0x219   : > { %v783_v45 = vmax.f32 %v781_v30, %v2420_v43 }
 0x21d   : > { %v2423_v47 = vpop.f32.mrb[36].mxu0 }
 0x21e   : > { %v747_v49 = vmax.f32 %v745_v35, %v2423_v47  ;;  %v2426_v51 = vpop.f32.mrb[37].mxu0 }
 0x21f   : > { %v784_v53 = vmax.f32 %v782_v37, %v2426_v51  ;;  %v2429_v55 = vpop.f32.mrb[38].mxu0 }
 0x220   : > { %v748_v57 = vmax.f32 %v746_v41, %v2429_v55  ;;  %v2432_v59 = vpop.f32.mrb[39].mxu0 }
 0x221   : > { %3078 = vst [vmem:[#allocation26_spill] sm:$0xff] %v2432_v59  ;;  %v785_v61 = vmax.f32 %v783_v45, %v2432_v59 }
 0x225   : > { %v2435_v63 = vpop.f32.mrb[40].mxu0 }
 0x226   : > { %3079 = vst [vmem:[#allocation27_spill] sm:$0xff] %v2435_v63  ;;  %v749_v2 = vmax.f32 %v747_v49, %v2435_v63  ;;  %v2438_v4 = vpop.f32.mrb[41].mxu0 }
 0x227   : > { %3080 = vst [vmem:[#allocation28_spill] sm:$0xff] %v2438_v4  ;;  %v786_v6 = vmax.f32 %v784_v53, %v2438_v4  ;;  %v2441_v8 = vpop.f32.mrb[42].mxu0  ;;  %v3102_v4 = vlaneseq }
 0x228   : > { %3081 = vst [vmem:[#allocation29_spill] sm:$0xff] %v2441_v8  ;;  %v750_v10 = vmax.f32 %v748_v57, %v2441_v8  ;;  %v2444_v12 = vpop.f32.mrb[43].mxu0 }
 0x229   : > { %3082 = vst [vmem:[#allocation30_spill] sm:$0xff] %v2444_v12  ;;  %v787_v14 = vmax.f32 %v785_v61, %v2444_v12 }
 0x22d   : > { %v2447_v16 = vpop.f32.mrb[44].mxu0 }
 0x22e   : > { %3083 = vst [vmem:[#allocation31_spill] sm:$0xff] %v2447_v16  ;;  %v751_v18 = vmax.f32 %v749_v2, %v2447_v16  ;;  %v2450_v20 = vpop.f32.mrb[45].mxu0 }
 0x22f   : > { %3084 = vst [vmem:[#allocation32_spill] sm:$0xff] %v2450_v20  ;;  %v788_v22 = vmax.f32 %v786_v6, %v2450_v20  ;;  %v2453_v30 = vpop.f32.mrb[46].mxu0 }
 0x230   : > { %3085 = vst [vmem:[#allocation33_spill] sm:$0xff] %v2453_v30  ;;  %v752_v35 = vmax.f32 %v750_v10, %v2453_v30  ;;  %v2456_v37 = vpop.f32.mrb[47].mxu0 }
 0x231   : > { %3086 = vst [vmem:[#allocation34_spill] sm:$0xff] %v2456_v37  ;;  %v789_v41 = vmax.f32 %v787_v14, %v2456_v37 }
 0x235   : > { %v2459_v45 = vpop.f32.mrb[48].mxu0 }
 0x236   : > { %3087 = vst [vmem:[#allocation35_spill] sm:$0xff] %v2459_v45  ;;  %v753_v49 = vmax.f32 %v751_v18, %v2459_v45  ;;  %v2462_v53 = vpop.f32.mrb[49].mxu0 }
 0x237   : > { %3088 = vst [vmem:[#allocation36_spill] sm:$0xff] %v2462_v53  ;;  %v790_v57 = vmax.f32 %v788_v22, %v2462_v53  ;;  %v2465_v61 = vpop.f32.mrb[50].mxu0 }
 0x238   : > { %3089 = vst [vmem:[#allocation37_spill] sm:$0xff] %v2465_v61  ;;  %v754_v2 = vmax.f32 %v752_v35, %v2465_v61  ;;  %v2468_v6 = vpop.f32.mrb[51].mxu0 }
 0x239   : > { %3090 = vst [vmem:[#allocation38_spill] sm:$0xff] %v2468_v6  ;;  %v791_v10 = vmax.f32 %v789_v41, %v2468_v6 }
 0x23d   : > { %v2471_v0 = vpop.f32.mrb[52].mxu0 }
 0x23e   : > { %3091 = vst [vmem:[#allocation39_spill] sm:$0xff] %v2471_v0  ;;  %v755_v14 = vmax.f32 %v753_v49, %v2471_v0  ;;  %v2474_v28 = vpop.f32.mrb[53].mxu0 }
 0x23f   : > { %3092 = vst [vmem:[#allocation40_spill] sm:$0xff] %v2474_v28  ;;  %v792_v18 = vmax.f32 %v790_v57, %v2474_v28  ;;  %v2477_v45 = vpop.f32.mrb[54].mxu0 }
 0x240   : > { %3093 = vst [vmem:[#allocation41_spill] sm:$0xff] %v2477_v45  ;;  %v756_v22 = vmax.f32 %v754_v2, %v2477_v45  ;;  %v2480_v53 = vpop.f32.mrb[55].mxu0 }
 0x241   : > { %3094 = vst [vmem:[#allocation42_spill] sm:$0xff] %v2480_v53  ;;  %v793_v35 = vmax.f32 %v791_v10, %v2480_v53 }
 0x245   : > { %v2483_v61 = vpop.f32.mrb[56].mxu0 }
 0x246   : > { %3095 = vst [vmem:[#allocation43_spill] sm:$0xff] %v2483_v61  ;;  %v757_v41 = vmax.f32 %v755_v14, %v2483_v61  ;;  %v2486_v6 = vpop.f32.mrb[57].mxu0 }
 0x247   : > { %3096 = vst [vmem:[#allocation44_spill] sm:$0xff] %v2486_v6  ;;  %v794_v49 = vmax.f32 %v792_v18, %v2486_v6  ;;  %v2489_v0 = vpop.f32.mrb[58].mxu0 }
 0x248   : > { %3097 = vst [vmem:[#allocation45_spill] sm:$0xff] %v2489_v0  ;;  %v758_v57 = vmax.f32 %v756_v22, %v2489_v0  ;;  %v2492_v28 = vpop.f32.mrb[59].mxu0 }
 0x249   : > { %3098 = vst [vmem:[#allocation46_spill] sm:$0xff] %v2492_v28  ;;  %v795_v2 = vmax.f32 %v793_v35, %v2492_v28 }
 0x24d   : > { %v2495_v45 = vpop.f32.mrb[60].mxu0  ;;  %v3126_v32 = vld [vmem:[#allocation43_spill] sm:$0xff] }
 0x24e   : > { %3099 = vst [vmem:[#allocation47_spill] sm:$0xff] %v2495_v45  ;;  %v759_v10 = vmax.f32 %v757_v41, %v2495_v45  ;;  %v2498_v53 = vpop.f32.mrb[61].mxu0  ;;  %v1992_v41 = vmov 1966171168  }
 0x24f   : > { %3100 = vst [vmem:[#allocation48_spill] sm:$0xff] %v2498_v53  ;;  %v796_v14 = vmax.f32 %v794_v49, %v2498_v53  ;;  %v2501_v61 = vpop.f32.mrb[62].mxu0  ;;  %v809_v45 = vunpack.c.l.s4 %v1992_v41 }
 0x250   : > { %3101 = vst [vmem:[#allocation49_spill] sm:$0xff] %v2501_v61  ;;  %v760_v18 = vmax.f32 %v758_v57, %v2501_v61  ;;  %v2504_v6 = vpop.f32.mrb[63].mxu0  ;;  %v812_v57 = vshrl.u32 %v3102_v4, 7 }
 0x251   : > { %v797_v22 = vmax.f32 %v795_v2, %v2504_v6  ;;  %v810_v8 = vunpack.c.0.s8 %v809_v45 }
 0x252   : > { %v761_v0 = vmax.f32 %v759_v10, %v760_v18  ;;  %v2520_v4 = vsub.s32 0, %v812_v57 }
 0x253   : > { %v798_v37 = vmax.f32 %v796_v14, %v797_v22  ;;  %v2508_v10 = vsub.s32 %v810_v8, %v812_v57 }
 0x254   : > { %v762_v30 = vrot.slane %v761_v0, 4  ;;  %3106 = vst [vmem:[#allocation53_spill] sm:$0xff] %v2520_v4 }
 0x255   : > { %v799_v35 = vrot.slane %v798_v37, 4  ;;  %3103 = vst [vmem:[#allocation50_spill] sm:$0xff] %v2508_v10 }
 0x256   : > { %v763_v28 = vmax.f32 %v761_v0, %v762_v30  ;;  %v2513_v30 = vld [vmem:[%s345_s12] sm:$0xff] }
 0x257   : > { %v800_v20 = vmax.f32 %v798_v37, %v799_v35  ;;  %3104 = vst [vmem:[#allocation51_spill] sm:$0xff] %v2513_v30  ;;  %v2515_v37 = vld [vmem:[#allocation3] sm:$0x3]  ;;  %v3132_v35 = vld [vmem:[#allocation49_spill] sm:$0xff] }
 0x258   : > { %v764_v16 = vrot.slane %v763_v28, 2  ;;  %3105 = vst [vmem:[#allocation52_spill] sm:$0xff] %v2515_v37 }
 0x259   : > { %v801_v12 = vrot.slane %v800_v20, 2 }
 0x25a   : > { %v765_v49 = vmax.f32 %v763_v28, %v764_v16  ;;  %v1539_v28 = vcombine.high %v2513_v30, %v2513_v30  ;;  %v2522_v16 = vsub.s32 1, %v812_v57  ;;  %v3113_v57 = vld [vmem:[#allocation30_spill] sm:$0xff]  ;;  %v3128_v30 = vld [vmem:[#allocation45_spill] sm:$0xff] }
 0x25b   : > { %v802_v53 = vmax.f32 %v800_v20, %v801_v12 }
 0x25c   : > { %v766_v61 = vrot.slane %v765_v49, 1  ;;  %3107 = vst [vmem:[#allocation54_spill] sm:$0xff] %v2522_v16  ;;  %1216 = vmatprep.mubr.bf16.mxu1 %v1539_v28  ;;  %v3110_v28 = vld [vmem:[#allocation27_spill] sm:$0xff] }
 0x25d   : > { %v803_v63 = vrot.slane %v802_v53, 1 }
 0x25e   : > { %v767_v59 = vmax.f32 %v765_v49, %v766_v61  ;;  %v3116_v49 = vld [vmem:[#allocation33_spill] sm:$0xff] }
 0x25f   : > { %v804_v2 = vmax.f32 %v802_v53, %v803_v63 }
 0x261   : > { %v807_v14 = vcombine.low %v767_v59, %v804_v2  ;;  %v3112_v59 = vld [vmem:[#allocation29_spill] sm:$0xff]  ;;  %v3114_v2 = vld [vmem:[#allocation31_spill] sm:$0xff] }
 0x263   : > { %v814_v0 = vrot.slane %v807_v14, %v2508_v10  ;;  %v3115_v14 = vld [vmem:[#allocation32_spill] sm:$0xff] }
 0x265   : > { %v821_v12 = vrot.slane %v814_v0, %v2508_v10  ;;  %v3109_v0 = vld [vmem:[#allocation26_spill] sm:$0xff] }
 0x267   : > { %v2525_v63 = vmax.f32 %v2515_v37, %v821_v12  ;;  %v3111_v12 = vld [vmem:[#allocation28_spill] sm:$0xff] }
 0x269   : > { %3108 = vst [vmem:[#allocation55_spill] sm:$0xff] %v2525_v63  ;;  %v2531_v8 = vrot.slane %v2525_v63, %v2520_v4  ;;  %v2535_v20 = vrot.slane %v2525_v63, %v2522_v16  ;;  %1229 = vst.msk [vmem:[#allocation3] sm:$0x3] %vm2321_vm2, %v2525_v63  ;;  %v3129_v63 = vld [vmem:[#allocation46_spill] sm:$0xff] }
 0x26b   : > { %v3133_v18 = vsub.f32 %v2306_v24, %v2531_v8  ;;  %v3134_v61 = vsub.f32 %v2308_v25, %v2535_v20  ;;  %v3135_v45 = vsub.f32 %v2310_v26, %v2531_v8  ;;  %v3136_v16 = vsub.f32 %v2312_v27, %v2535_v20 }
 0x26c   : > { %v3137_v22 = vsub.f32 %v2314_v29, %v2531_v8  ;;  %v3138_v24 = vsub.f32 %v2318_v31, %v2535_v20  ;;  %v3139_v25 = vsub.f32 %v2327_v34, %v2531_v8  ;;  %v3140_v27 = vsub.f32 %v2335_v38, %v2535_v20 }
 0x26d   : > { %v902_v10 = vmul.f32 1.442695, %v3133_v18  ;;  %v904_v53 = vmul.f32 1.442695, %v3134_v61  ;;  %v906_v37 = vmul.f32 1.442695, %v3135_v45  ;;  %v3141_v29 = vsub.f32 %v2339_v40, %v2531_v8 }
 0x26e   : > { %v908_v41 = vmul.f32 1.442695, %v3136_v16  ;;  %v910_v4 = vmul.f32 1.442695, %v3137_v22  ;;  %v912_v18 = vmul.f32 1.442695, %v3138_v24  ;;  %v3142_v31 = vsub.f32 %v2342_v42, %v2535_v20 }
 0x26f   : > { %1641 = vpow2.f32 %v902_v10  ;;  %v914_v26 = vmul.f32 1.442695, %v3139_v25  ;;  %v916_v16 = vmul.f32 1.442695, %v3140_v27  ;;  %v918_v10 = vmul.f32 1.442695, %v3141_v29 }
 0x270   : > { %1643 = vpow2.f32 %v904_v53  ;;  %v920_v45 = vmul.f32 1.442695, %v3142_v31  ;;  %v3143_v34 = vsub.f32 %v2345_v44, %v2531_v8  ;;  %v3144_v38 = vsub.f32 %v2348_v46, %v2535_v20 }
 0x271   : > { %1645 = vpow2.f32 %v906_v37  ;;  %v3145_v40 = vsub.f32 %v2351_v48, %v2531_v8  ;;  %v3146_v42 = vsub.f32 %v2354_v50, %v2535_v20  ;;  %v3147_v44 = vsub.f32 %v2357_v52, %v2531_v8 }
 0x272   : > { %1647 = vpow2.f32 %v908_v41  ;;  %v922_v37 = vmul.f32 1.442695, %v3143_v34  ;;  %v924_v53 = vmul.f32 1.442695, %v3144_v38  ;;  %v3148_v46 = vsub.f32 %v2360_v54, %v2535_v20 }
 0x273   : > { %1649 = vpow2.f32 %v910_v4  ;;  %v926_v4 = vmul.f32 1.442695, %v3145_v40  ;;  %v928_v61 = vmul.f32 1.442695, %v3146_v42  ;;  %v930_v41 = vmul.f32 1.442695, %v3147_v44 }
 0x274   : > { %1651 = vpow2.f32 %v912_v18  ;;  %v932_v18 = vmul.f32 1.442695, %v3148_v46  ;;  %v3149_v48 = vsub.f32 %v2363_v56, %v2531_v8  ;;  %v3150_v27 = vsub.f32 %v2366_v58, %v2535_v20 }
 0x275   : > { %1653 = vpow2.f32 %v914_v26  ;;  %v3151_v29 = vsub.f32 %v2369_v60, %v2531_v8  ;;  %v3152_v31 = vsub.f32 %v2372_v62, %v2535_v20  ;;  %v3153_v34 = vsub.f32 %v2375_v1, %v2531_v8 }
 0x276   : > { %1655 = vpow2.f32 %v916_v16  ;;  %v934_v26 = vmul.f32 1.442695, %v3149_v48  ;;  %v936_v16 = vmul.f32 1.442695, %v3150_v27  ;;  %v3154_v38 = vsub.f32 %v2378_v3, %v2535_v20 }
 0x277   : > { %1657 = vpow2.f32 %v918_v10  ;;  %v938_v10 = vmul.f32 1.442695, %v3151_v29  ;;  %v3155_v40 = vsub.f32 %v2381_v5, %v2531_v8  ;;  %v3157_v1 = vsub.f32 %v2387_v9, %v2531_v8 }
 0x278   : > { %1659 = vpow2.f32 %v920_v45  ;;  %v940_v45 = vmul.f32 1.442695, %v3152_v31  ;;  %v3158_v3 = vsub.f32 %v2390_v11, %v2535_v20  ;;  %v3159_v46 = vsub.f32 %v2393_v13, %v2531_v8 }
 0x279   : > { %v1642_v22 = vpop.eup %1641  ;;  %1661 = vpow2.f32 %v922_v37  ;;  %v942_v37 = vmul.f32 1.442695, %v3153_v34  ;;  %v946_v62 = vmul.f32 1.442695, %v3155_v40 }
 0x27a   : > { %v1644_v24 = vpop.eup %1643  ;;  %1663 = vpow2.f32 %v924_v53  ;;  %v944_v53 = vmul.f32 1.442695, %v3154_v38 }
 0x27b   : > { %v1646_v25 = vpop.eup %1645  ;;  %1665 = vpow2.f32 %v926_v4  ;;  %v3156_v4 = vsub.f32 %v2384_v7, %v2535_v20 }
 0x27c   : > { %v1648_v50 = vpop.eup %1647  ;;  %1667 = vpow2.f32 %v928_v61  ;;  %v950_v61 = vmul.f32 1.442695, %v3157_v1  ;;  %v1032_v5 = vadd.f32 %v1646_v25, %v1642_v22  ;;  %v1145_v27 = vpack.c.bf16 %v1646_v25, %v1642_v22 }
 0x27d   : > { %v1650_v52 = vpop.eup %1649  ;;  %1669 = vpow2.f32 %v930_v41  ;;  %v948_v42 = vmul.f32 1.442695, %v3156_v4  ;;  %v952_v41 = vmul.f32 1.442695, %v3158_v3  ;;  %v1146_v7 = vpack.c.bf16 %v1648_v50, %v1644_v24 }
 0x27e   : > { %v1652_v54 = vpop.eup %1651  ;;  %1671 = vpow2.f32 %v932_v18  ;;  %v954_v18 = vmul.f32 1.442695, %v3159_v46  ;;  %v1033_v9 = vadd.f32 %v1650_v52, %v1032_v5  ;;  %v3163_v4 = vsub.f32 %v2405_v21, %v2531_v8 }
 0x27f   : > { %v1654_v56 = vpop.eup %1653  ;;  %1673 = vpow2.f32 %v934_v26  ;;  %v1069_v26 = vadd.f32 %v1648_v50, %v1644_v24  ;;  %1184 = vmatprep.subr.bf16.mxu1 %v1146_v7  ;;  %v3161_v50 = vsub.f32 %v2399_v17, %v2531_v8  ;;  %v3167_v7 = vsub.f32 %v2417_v39, %v2531_v8 }
 0x280   : > { %v1656_v58 = vpop.eup %1655  ;;  %1675 = vpow2.f32 %v936_v16  ;;  %v1034_v22 = vadd.f32 %v1654_v56, %v1033_v9  ;;  %1185 = vmatpush1.bf16.msra.mxu1 %v1145_v27  ;;  %v962_v17 = vmul.f32 1.442695, %v3163_v4 }
 0x281   : > { %v2734_v60 = vpop.eup %1657  ;;  %1677 = vpow2.f32 %v938_v10  ;;  %v1148_v29 = vpack.c.bf16 %v1656_v58, %v1652_v54  ;;  %v1147_v10 = vpack.c.bf16 %v1654_v56, %v1650_v52  ;;  %v1070_v11 = vadd.f32 %v1652_v54, %v1069_v26 }
 0x282   : > { %v1660_v44 = vpop.eup %1659  ;;  %1679 = vpow2.f32 %v940_v45  ;;  %v958_v52 = vmul.f32 1.442695, %v3161_v50 }
 0x283   : > { %v1662_v48 = vpop.eup %1661  ;;  %1681 = vpow2.f32 %v942_v37  ;;  %v3160_v37 = vsub.f32 %v2396_v15, %v2535_v20  ;;  %v1071_v38 = vadd.f32 %v1656_v58, %v1070_v11  ;;  %1186 = vmatprep.subr.bf16.mxu1 %v1148_v29  ;;  %v3168_v29 = vsub.f32 %v2420_v43, %v2535_v20 }
 0x284   : > { %v1664_v16 = vpop.eup %1663  ;;  %1683 = vpow2.f32 %v944_v53  ;;  %v1149_v13 = vpack.c.bf16 %v1662_v48, %v2734_v60  ;;  %v3162_v53 = vsub.f32 %v2402_v19, %v2535_v20  ;;  %1187 = vmatpush1.bf16.msra.mxu1 %v1147_v10  ;;  %v3169_v11 = vsub.f32 %v2423_v47, %v2531_v8 }
 0x285   : > { %v2751_v31 = vpop.eup %1665  ;;  %1685 = vpow2.f32 %v946_v62  ;;  %v1150_v45 = vpack.c.bf16 %v1664_v16, %v1660_v44  ;;  %v956_v24 = vmul.f32 1.442695, %v3160_v37  ;;  %v1035_v62 = vadd.f32 %v2734_v60, %v1034_v22 }
 0x286   : > { %v1668_v34 = vpop.eup %1667  ;;  %1687 = vpow2.f32 %v948_v42  ;;  %v960_v40 = vmul.f32 1.442695, %v3162_v53  ;;  %v1072_v42 = vadd.f32 %v1660_v44, %v1071_v38  ;;  %v3166_v44 = vsub.f32 %v2414_v36, %v2535_v20 }
 0x287   : > { %v1670_v25 = vpop.eup %1669  ;;  %1689 = vpow2.f32 %v950_v61  ;;  %v3164_v61 = vsub.f32 %v2408_v23, %v2535_v20  ;;  %v1036_v3 = vadd.f32 %v1662_v48, %v1035_v62  ;;  %1188 = vmatprep.subr.bf16.mxu1 %v1150_v45  ;;  %v972_v36 = vmul.f32 1.442695, %v3168_v29 }
 0x288   : > { %v1672_v54 = vpop.eup %1671  ;;  %1691 = vpow2.f32 %v952_v41  ;;  %v1151_v15 = vpack.c.bf16 %v1670_v25, %v2751_v31  ;;  %v3165_v41 = vsub.f32 %v2411_v33, %v2531_v8  ;;  %v968_v5 = vmul.f32 1.442695, %v3166_v44  ;;  %1189 = vmatpush1.bf16.msra.mxu1 %v1149_v13 }
 0x289   : > { %v2765_v56 = vpop.eup %1673  ;;  %1693 = vpow2.f32 %v954_v18  ;;  %v1152_v58 = vpack.c.bf16 %v1672_v54, %v1668_v34  ;;  %v964_v19 = vmul.f32 1.442695, %v3164_v61  ;;  %v1073_v18 = vadd.f32 %v1664_v16, %v1072_v42 }
 0x28a   : > { %v1676_v1 = vpop.eup %1675  ;;  %1695 = vpow2.f32 %v956_v24  ;;  %v966_v46 = vmul.f32 1.442695, %v3165_v41  ;;  %v1037_v26 = vadd.f32 %v2751_v31, %v1036_v3  ;;  %v970_v33 = vmul.f32 1.442695, %v3167_v7 }
 0x28b   : > { %v1678_v60 = vpop.eup %1677  ;;  %1697 = vpow2.f32 %v958_v52  ;;  %v1074_v27 = vadd.f32 %v1668_v34, %v1073_v18  ;;  %v974_v45 = vmul.f32 1.442695, %v3169_v11  ;;  %1190 = vmatprep.subr.bf16.mxu1 %v1152_v58  ;;  %v3170_v34 = vsub.f32 %v2426_v51, %v2535_v20 }
 0x28c   : > { %v1680_v21 = vpop.eup %1679  ;;  %1699 = vpow2.f32 %v960_v40  ;;  %v1153_v23 = vpack.c.bf16 %v1678_v60, %v2765_v56  ;;  %v1038_v10 = vadd.f32 %v1670_v25, %v1037_v26  ;;  %v3171_v13 = vsub.f32 %v2429_v55, %v2531_v8  ;;  %1191 = vmatpush1.bf16.msra.mxu1 %v1151_v15 }
 0x28d   : > { %v2781_v48 = vpop.eup %1681  ;;  %1701 = vpow2.f32 %v962_v17  ;;  %v1154_v16 = vpack.c.bf16 %v1680_v21, %v1676_v1  ;;  %v1075_v37 = vadd.f32 %v1672_v54, %v1074_v27  ;;  %v976_v24 = vmul.f32 1.442695, %v3170_v34 }
 0x28e   : > { %v1684_v9 = vpop.eup %1683  ;;  %1703 = vpow2.f32 %v964_v19  ;;  %v1039_v22 = vadd.f32 %v2765_v56, %v1038_v10  ;;  %v978_v47 = vmul.f32 1.442695, %v3171_v13  ;;  %v3172_v54 = vsub.f32 %v3109_v0, %v2535_v20 }
 0x28f   : > { %v1686_v31 = vpop.eup %1685  ;;  %1705 = vpow2.f32 %v966_v46  ;;  %v1076_v50 = vadd.f32 %v1676_v1, %v1075_v37  ;;  %v3173_v62 = vsub.f32 %v3110_v28, %v2531_v8  ;;  %1192 = vmatprep.subr.bf16.mxu1 %v1154_v16  ;;  %v3174_v17 = vsub.f32 %v3111_v12, %v2535_v20 }
 0x290   : > { %v1688_v39 = vpop.eup %1687  ;;  %1707 = vpow2.f32 %v968_v5  ;;  %v1155_v43 = vpack.c.bf16 %v1686_v31, %v2781_v48  ;;  %v980_v51 = vmul.f32 1.442695, %v3172_v54  ;;  %v1040_v53 = vadd.f32 %v1678_v60, %v1039_v22  ;;  %1193 = vmatpush1.bf16.msra.mxu1 %v1153_v23 }
 0x291   : > { %v2797_v25 = vpop.eup %1689  ;;  %1709 = vpow2.f32 %v970_v33  ;;  %v1156_v52 = vpack.c.bf16 %v1688_v39, %v1684_v9  ;;  %v982_v56 = vmul.f32 1.442695, %v3173_v62  ;;  %v1077_v4 = vadd.f32 %v1680_v21, %v1076_v50 }
 0x292   : > { %v1692_v38 = vpop.eup %1691  ;;  %1711 = vpow2.f32 %v972_v36  ;;  %v984_v42 = vmul.f32 1.442695, %v3174_v17  ;;  %v1041_v58 = vadd.f32 %v2781_v48, %v1040_v53  ;;  %v3175_v15 = vsub.f32 %v3112_v59, %v2531_v8 }
 0x293   : > { %v1694_v40 = vpop.eup %1693  ;;  %1713 = vpow2.f32 %v974_v45  ;;  %v1078_v61 = vadd.f32 %v1684_v9, %v1077_v4  ;;  %v3176_v60 = vsub.f32 %v3113_v57, %v2535_v20  ;;  %v3177_v18 = vsub.f32 %v3114_v2, %v2531_v8  ;;  %1194 = vmatprep.subr.bf16.mxu1 %v1156_v52  ;;  %v3180_v9 = vld [vmem:[#allocation34_spill] sm:$0xff]  ;;  %v3190_v4 = vld [vmem:[#allocation39_spill] sm:$0xff] }
 0x294   : > { %v1696_v55 = vpop.eup %1695  ;;  %1715 = vpow2.f32 %v976_v24  ;;  %v1157_v0 = vpack.c.bf16 %v1694_v40, %v2797_v25  ;;  %v986_v28 = vmul.f32 1.442695, %v3175_v15  ;;  %v1042_v41 = vadd.f32 %v1686_v31, %v1041_v58  ;;  %1195 = vmatpush1.bf16.msra.mxu1 %v1155_v43  ;;  %v3182_v31 = vld [vmem:[#allocation35_spill] sm:$0xff]  ;;  %v3186_v43 = vld [vmem:[#allocation37_spill] sm:$0xff] }
 0x295   : > { %v2813_v1 = vpop.eup %1697  ;;  %1717 = vpow2.f32 %v978_v47  ;;  %v1158_v19 = vpack.c.bf16 %v1696_v55, %v1692_v38  ;;  %v988_v12 = vmul.f32 1.442695, %v3176_v60  ;;  %v990_v21 = vmul.f32 1.442695, %v3177_v18 }
 0x296   : > { %v1700_v3 = vpop.eup %1699  ;;  %1719 = vpow2.f32 %v980_v51  ;;  %v1079_v44 = vadd.f32 %v1688_v39, %v1078_v61  ;;  %v3178_v5 = vsub.f32 %v3115_v14, %v2535_v20  ;;  %v1043_v48 = vadd.f32 %v2797_v25, %v1042_v41  ;;  %v3184_v39 = vld [vmem:[#allocation36_spill] sm:$0xff]  ;;  %v3188_v51 = vld [vmem:[#allocation38_spill] sm:$0xff] }
 0x297   : > { %v1702_v46 = vpop.eup %1701  ;;  %1721 = vpow2.f32 %v982_v56  ;;  %v3179_v23 = vsub.f32 %v3116_v49, %v2531_v8  ;;  %v3181_v29 = vsub.f32 %v3180_v9, %v2535_v20  ;;  %v3183_v11 = vsub.f32 %v3182_v31, %v2531_v8  ;;  %1196 = vmatprep.subr.bf16.mxu1 %v1158_v19 }
 0x298   : > { %v1704_v59 = vpop.eup %1703  ;;  %1723 = vpow2.f32 %v984_v42  ;;  %v992_v26 = vmul.f32 1.442695, %v3178_v5  ;;  %v1159_v57 = vpack.c.bf16 %v1702_v46, %v2813_v1  ;;  %v1080_v33 = vadd.f32 %v1692_v38, %v1079_v44  ;;  %1197 = vmatpush1.bf16.msra.mxu1 %v1157_v0  ;;  %v3194_v0 = vld [vmem:[#allocation41_spill] sm:$0xff] }
 0x299   : > { %v2829_v7 = vpop.eup %1705  ;;  %1725 = vpow2.f32 %v986_v28  ;;  %v994_v2 = vmul.f32 1.442695, %v3179_v23  ;;  %v1160_v27 = vpack.c.bf16 %v1704_v59, %v1700_v3  ;;  %v996_v14 = vmul.f32 1.442695, %v3181_v29 }
 0x29a   : > { %v1708_v16 = vpop.eup %1707  ;;  %1727 = vpow2.f32 %v988_v12  ;;  %v1044_v36 = vadd.f32 %v1694_v40, %v1043_v48  ;;  %v998_v45 = vmul.f32 1.442695, %v3183_v11  ;;  %v1081_v37 = vadd.f32 %v1696_v55, %v1080_v33  ;;  %v3199_v33 = vld [vmem:[#allocation44_spill] sm:$0xff] }
 0x29b   : > { %v1710_v10 = vpop.eup %1709  ;;  %1729 = vpow2.f32 %v990_v21  ;;  %v3185_v34 = vsub.f32 %v3184_v39, %v2535_v20  ;;  %v3187_v47 = vsub.f32 %v3186_v43, %v2531_v8  ;;  %v3189_v53 = vsub.f32 %v3188_v51, %v2535_v20  ;;  %1198 = vmatprep.subr.bf16.mxu1 %v1160_v27  ;;  %v3196_v21 = vld [vmem:[#allocation42_spill] sm:$0xff]  ;;  %v3203_v39 = vld [vmem:[#allocation47_spill] sm:$0xff] }
 0x29c   : > { %v1712_v49 = vpop.eup %1711  ;;  %1731 = vpow2.f32 %v992_v26  ;;  %v1045_v22 = vadd.f32 %v2813_v1, %v1044_v36  ;;  %v1161_v25 = vpack.c.bf16 %v1710_v10, %v2829_v7  ;;  %v1082_v52 = vadd.f32 %v1700_v3, %v1081_v37  ;;  %v3192_v1 = vld [vmem:[#allocation40_spill] sm:$0xff]  ;;  %1199 = vmatpush1.bf16.msra.mxu1 %v1159_v57 }
 0x29d   : > { %v1000_v24 = vmul.f32 1.442695, %v3185_v34  ;;  %v2845_v13 = vpop.eup %1713  ;;  %1733 = vpow2.f32 %v994_v2  ;;  %v1002_v50 = vmul.f32 1.442695, %v3187_v47  ;;  %v1162_v38 = vpack.c.bf16 %v1712_v49, %v1708_v16 }
 0x29e   : > { %v1716_v54 = vpop.eup %1715  ;;  %1735 = vpow2.f32 %v996_v14  ;;  %v1004_v40 = vmul.f32 1.442695, %v3189_v53  ;;  %v1046_v62 = vadd.f32 %v1702_v46, %v1045_v22  ;;  %v3191_v55 = vsub.f32 %v3190_v4, %v2531_v8 }
 0x29f   : > { %v1718_v56 = vpop.eup %1717  ;;  %1737 = vpow2.f32 %v998_v45  ;;  %v1083_v42 = vadd.f32 %v1704_v59, %v1082_v52  ;;  %v3193_v15 = vsub.f32 %v3192_v1, %v2535_v20  ;;  %v3195_v60 = vsub.f32 %v3194_v0, %v2531_v8  ;;  %1200 = vmatprep.subr.bf16.mxu1 %v1162_v38 }
 0x2a0   : > { %v1006_v17 = vmul.f32 1.442695, %v3191_v55  ;;  %v1720_v58 = vpop.eup %1719  ;;  %1739 = vpow2.f32 %v1000_v24  ;;  %v1047_v61 = vadd.f32 %v2829_v7, %v1046_v62  ;;  %v1163_v19 = vpack.c.bf16 %v1718_v56, %v2845_v13  ;;  %1201 = vmatpush1.bf16.msra.mxu1 %v1161_v25 }
 0x2a1   : > { %v1008_v28 = vmul.f32 1.442695, %v3193_v15  ;;  %v2861_v3 = vpop.eup %1721  ;;  %1741 = vpow2.f32 %v1002_v50  ;;  %v1010_v12 = vmul.f32 1.442695, %v3195_v60  ;;  %v1084_v41 = vadd.f32 %v1708_v16, %v1083_v42 }
 0x2a2   : > { %v1164_v46 = vpack.c.bf16 %v1720_v58, %v1716_v54  ;;  %v1724_v18 = vpop.eup %1723  ;;  %1743 = vpow2.f32 %v1004_v40  ;;  %v3197_v44 = vsub.f32 %v3196_v21, %v2535_v20  ;;  %v1048_v5 = vadd.f32 %v1710_v10, %v1047_v61 }
 0x2a3   : > { %v1726_v26 = vpop.eup %1725  ;;  %1745 = vpow2.f32 %v1006_v17  ;;  %v3198_v48 = vsub.f32 %v3126_v32, %v2531_v8  ;;  %v1085_v23 = vadd.f32 %v1712_v49, %v1084_v41  ;;  %v3200_v27 = vsub.f32 %v3199_v33, %v2535_v20 }
 0x2a4   : > { %v1012_v59 = vmul.f32 1.442695, %v3197_v44  ;;  %v1728_v2 = vpop.eup %1727  ;;  %1747 = vpow2.f32 %v1008_v28  ;;  %v1049_v9 = vadd.f32 %v2845_v13, %v1048_v5  ;;  %v1165_v29 = vpack.c.bf16 %v1726_v26, %v2861_v3  ;;  %1202 = vmatprep.subr.bf16.mxu1 %v1164_v46  ;;  %v3205_v13 = vld [vmem:[#allocation48_spill] sm:$0xff] }
 0x2a5   : > { %v1014_v7 = vmul.f32 1.442695, %v3198_v48  ;;  %v1016_v16 = vmul.f32 1.442695, %v3200_v27  ;;  %v1730_v14 = vpop.eup %1729  ;;  %1749 = vpow2.f32 %v1010_v12  ;;  %v3201_v57 = vsub.f32 %v3128_v30, %v2531_v8  ;;  %1203 = vmatpush1.bf16.msra.mxu1 %v1163_v19 }
 0x2a6   : > { %v1086_v32 = vadd.f32 %v1716_v54, %v1085_v23  ;;  %v1166_v10 = vpack.c.bf16 %v1728_v2, %v1724_v18  ;;  %v1732_v31 = vpop.eup %1731  ;;  %1751 = vpow2.f32 %v1012_v59  ;;  %v3202_v11 = vsub.f32 %v3129_v63, %v2535_v20 }
 0x2a7   : > { %v1018_v36 = vmul.f32 1.442695, %v3201_v57  ;;  %v1050_v37 = vadd.f32 %v1718_v56, %v1049_v9  ;;  %v1734_v49 = vpop.eup %1733  ;;  %1753 = vpow2.f32 %v1014_v7  ;;  %v3204_v34 = vsub.f32 %v3203_v39, %v2531_v8 }
 0x2a8   : > { %v1020_v45 = vmul.f32 1.442695, %v3202_v11  ;;  %v1087_v22 = vadd.f32 %v1720_v58, %v1086_v32  ;;  %v1736_v30 = vpop.eup %1735  ;;  %1755 = vpow2.f32 %v1016_v16  ;;  %v3206_v43 = vsub.f32 %v3205_v13, %v2535_v20  ;;  %1204 = vmatprep.subr.bf16.mxu1 %v1166_v10 }
 0x2a9   : > { %v1022_v24 = vmul.f32 1.442695, %v3204_v34  ;;  %v1051_v50 = vadd.f32 %v2861_v3, %v1050_v37  ;;  %v1167_v63 = vpack.c.bf16 %v1734_v49, %v1730_v14  ;;  %v1738_v52 = vpop.eup %1737  ;;  %1757 = vpow2.f32 %v1018_v36  ;;  %1205 = vmatpush1.bf16.msra.mxu1 %v1165_v29  ;;  %v3209_v37 = vld [vmem:[#allocation52_spill] sm:$0xff] }
 0x2aa   : > { %v1024_v47 = vmul.f32 1.442695, %v3206_v43  ;;  %v3207_v25 = vsub.f32 %v3132_v35, %v2531_v8  ;;  %v1088_v54 = vadd.f32 %v1724_v18, %v1087_v22  ;;  %v1168_v51 = vpack.c.bf16 %v1736_v30, %v1732_v31  ;;  %v1740_v53 = vpop.eup %1739 }
 0x2ab   : > { %1759 = vpow2.f32 %v1020_v45  ;;  %v3208_v40 = vsub.f32 %v2504_v6, %v2535_v20  ;;  %v1052_v56 = vadd.f32 %v1726_v26, %v1051_v50  ;;  %v1742_v4 = vpop.eup %1741 }
 0x2ac   : > { %v1026_v38 = vmul.f32 1.442695, %v3207_v25  ;;  %1761 = vpow2.f32 %v1022_v24  ;;  %v1089_v55 = vadd.f32 %v1728_v2, %v1088_v54  ;;  %v1744_v17 = vpop.eup %1743  ;;  %v1169_v58 = vpack.c.bf16 %v1742_v4, %v1738_v52  ;;  %1206 = vmatprep.subr.bf16.mxu1 %v1168_v51 }
 0x2ad   : > { %v1028_v62 = vmul.f32 1.442695, %v3208_v40  ;;  %1763 = vpow2.f32 %v1024_v47  ;;  %v1053_v42 = vadd.f32 %v1730_v14, %v1052_v56  ;;  %v1746_v8 = vpop.eup %1745  ;;  %v1170_v1 = vpack.c.bf16 %v1744_v17, %v1740_v53  ;;  %1207 = vmatpush1.bf16.msra.mxu1 %v1167_v63 }
 0x2ae   : > { %1765 = vpow2.f32 %v1026_v38  ;;  %v1090_v35 = vadd.f32 %v1732_v31, %v1089_v55  ;;  %v1748_v15 = vpop.eup %1747  ;;  %v3213_v25 = vmov 0   ;;  %v3214_v55 = vld [vmem:[#allocation50_spill] sm:$0xff] }
 0x2af   : > { %1767 = vpow2.f32 %v1028_v62  ;;  %v1054_v28 = vadd.f32 %v1734_v49, %v1053_v42  ;;  %v1750_v6 = vpop.eup %1749  ;;  %1208 = vmatprep.subr.bf16.mxu1 %v1170_v1  ;;  %v3210_v49 = vld [vmem:[#allocation55_spill] sm:$0xff]  ;;  %v1253_v1 = vld [vmem:[%s2980_s5] sm:$0xf] }
 0x2b0   : > { %v1091_v20 = vadd.f32 %v1736_v30, %v1090_v35  ;;  %v1752_v61 = vpop.eup %1751  ;;  %v1171_v3 = vpack.c.bf16 %v1750_v6, %v1746_v8  ;;  %v3211_v39 = vsub.f32 %v3209_v37, %v3210_v49  ;;  %v3212_v30 = vld [vmem:[#allocation51_spill] sm:$0xff]  ;;  %1256 = vperm.xlu1 %1633, %v1253_v1  }
 0x2b1   : > { %v1055_v19 = vadd.f32 %v1738_v52, %v1054_v28  ;;  %v1754_v0 = vpop.eup %1753  ;;  %v1172_v12 = vpack.c.bf16 %v1752_v61, %v1748_v15  ;;  %1209 = vmatpush1.bf16.msra.mxu1 %v1169_v58  ;;  %v1538_v13 = vcombine.low %v3212_v30, %v3212_v30  ;;  %v3216_v28 = vld [vmem:[#allocation53_spill] sm:$0xff] }
 0x2b2   : > { %v1092_v60 = vadd.f32 %v1740_v53, %v1091_v20  ;;  %v1756_v41 = vpop.eup %1755  ;;  %v825_v34 = vmul.f32 1.442695, %v3211_v39  ;;  %v3217_v20 = vld [vmem:[#allocation54_spill] sm:$0xff] }
 0x2b3   : > { %v1056_v46 = vadd.f32 %v1742_v4, %v1055_v19  ;;  %v1758_v18 = vpop.eup %1757  ;;  %1210 = vmatprep.subr.bf16.mxu1 %v1172_v12  ;;  %v1030_v4 = vld [vmem:[#allocation4] sm:$0x3] }
 0x2b4   : > { %v1093_v21 = vadd.f32 %v1744_v17, %v1092_v60  ;;  %v1173_v5 = vpack.c.bf16 %v1758_v18, %v1754_v0  ;;  %1769 = vpow2.f32 %v825_v34 }
 0x2b5   : > { %v1760_v44 = vpop.eup %1759  ;;  %v1057_v59 = vadd.f32 %v1746_v8, %v1056_v46  ;;  %1211 = vmatpush1.bf16.msra.mxu1 %v1171_v3 }
 0x2b6   : > { %v1762_v26 = vpop.eup %1761  ;;  %v1094_v48 = vadd.f32 %v1748_v15, %v1093_v21  ;;  %v1174_v7 = vpack.c.bf16 %v1760_v44, %v1756_v41 }
 0x2b7   : > { %v1764_v23 = vpop.eup %1763  ;;  %v1058_v2 = vadd.f32 %v1750_v6, %v1057_v59 }
 0x2b8   : > { %v1766_v33 = vpop.eup %1765  ;;  %v1095_v27 = vadd.f32 %v1752_v61, %v1094_v48  ;;  %1212 = vmatprep.subr.bf16.mxu1 %v1174_v7 }
 0x2b9   : > { %v1768_v16 = vpop.eup %1767  ;;  %v1059_v9 = vadd.f32 %v1754_v0, %v1058_v2  ;;  %v1175_v29 = vpack.c.bf16 %v1766_v33, %v1762_v26  ;;  %1213 = vmatpush1.bf16.msra.mxu1 %v1173_v5  ;;  %v1252_v2 = vld [vmem:[%s2979_s4] sm:$0x3] }
 0x2ba   : > { %v1096_v14 = vadd.f32 %v1756_v41, %v1095_v27  ;;  %v1176_v57 = vpack.c.bf16 %v1768_v16, %v1764_v23 }
 0x2bb   : > { %v1060_v36 = vadd.f32 %v1758_v18, %v1059_v9 }
 0x2bc   : > { %v1097_v32 = vadd.f32 %v1760_v44, %v1096_v14  ;;  %1214 = vmatprep.subr.bf16.mxu1 %v1176_v57  ;;  %v1309_v57 = vld [vmem:[%s372_s20] sm:$0xff] }
 0x2bd   : > { %v1061_v10 = vadd.f32 %v1762_v26, %v1060_v36  ;;  %1215 = vmatpush1.bf16.msra.mxu1 %v1175_v29 }
 0x2be   : > { %v1098_v31 = vadd.f32 %v1764_v23, %v1097_v32  ;;  %v1770_v56 = vpop.eup %1769 }
 0x2bf   : > { %v1062_v11 = vadd.f32 %v1766_v33, %v1061_v10  ;;  %v1031_v42 = vmul.f32 %v1770_v56, %v1030_v4  ;;  %v1136_v6 = vrot.slane %v1770_v56, %v3216_v28  ;;  %v1140_v61 = vrot.slane %v1770_v56, %v3217_v20 }
 0x2c0   : > { %v1099_v45 = vadd.f32 %v1768_v16, %v1098_v31  ;;  %1217 = vmatmul.mubr.bf16.vlgmr.msra.gmra.mrb[0].mxu1 %v1538_v13 }
 0x2c1   : > { %v1063_v24 = vrot.slane %v1062_v11, 4  ;;  %1300 = vmatprep.mubr.bf16.mxu1 %v3213_v25  ;;  %v1143_v3 = vmul.f32 0.0, %v1136_v6  ;;  %v1144_v60 = vmul.f32 0.0, %v1140_v61 }
 0x2c2   : > { %v1100_v22 = vrot.slane %v1099_v45, 4 }
 0x2c3   : > { %v1064_v43 = vadd.f32 %v1063_v24, %v1062_v11 }
 0x2c4   : > { %v1101_v47 = vadd.f32 %v1100_v22, %v1099_v45 }
 0x2c5   : > { %v1065_v50 = vrot.slane %v1064_v43, 2 }
 0x2c6   : > { %v1102_v63 = vrot.slane %v1101_v47, 2 }
 0x2c7   : > { %v1066_v52 = vadd.f32 %v1065_v50, %v1064_v43 }
 0x2c8   : > { %v1103_v38 = vadd.f32 %v1102_v63, %v1101_v47 }
 0x2c9   : > { %v1067_v54 = vrot.slane %v1066_v52, 1 }
 0x2ca   : > { %v1104_v51 = vrot.slane %v1103_v38, 1 }
 0x2cb   : > { %v1068_v53 = vadd.f32 %v1067_v54, %v1066_v52 }
 0x2cc   : > { %v1105_v40 = vadd.f32 %v1104_v51, %v1103_v38 }
 0x2ce   : > { %v1108_v62 = vcombine.low %v1068_v53, %v1105_v40 }
 0x2d0   : > { %v1115_v17 = vrot.slane %v1108_v62, %v3214_v55 }
 0x2d2   : > { %v1122_v58 = vrot.slane %v1115_v17, %v3214_v55 }
 0x2d4   : > { %v1124_v8 = vadd.f32 %v1122_v58, %v1031_v42 }
 0x2d6   : > { %1129 = vst.msk [vmem:[#allocation4] sm:$0x3] %vm2321_vm2, %v1124_v8 }
 0x2dd   : > { %v1233_v15 = vld [vmem:[#allocation4] sm:$0x3] }
 0x2de   : > { %1771 = vrcp.f32 %v1233_v15 }
 0x2e8   : > { %v1772_v19 = vpop.eup %1771 }
 0x2e9   : > { %v1241_v41 = vrot.slane %v1772_v19, %v3216_v28  ;;  %v1245_v21 = vrot.slane %v1772_v19, %v3217_v20 }
 0x32f   : > { %v1257_v33 = vpop.permute.xlu1 %1256 }
 0x393   : > { %v1218_v0 = vpop.f32.mrb[0].mxu1 }
 0x394   : > { %v1225_v12 = vadd.f32 %v1218_v0, %v1143_v3  ;;  %v1220_v46 = vpop.f32.mrb[1].mxu1 }
 0x395   : > { %v1226_v18 = vadd.f32 %v1220_v46, %v1144_v60  ;;  %v1222_v44 = vpop.f32.mrb[2].mxu1 }
 0x396   : > { %v1248_v59 = vmul.f32 %v1241_v41, %v1225_v12  ;;  %v1223_v5 = vpop.f32.mrb[3].mxu1 }
 0x397   : > { %v1249_v26 = vmul.f32 %v1245_v21, %v1226_v18 }
 0x398   : > { %v1250_v48 = vpack.c.bf16 %v1248_v59, %v1248_v59 }
 0x399   : > { %v1251_v7 = vpack.c.bf16 %v1249_v26, %v1249_v26 }
 0x39a   : > { %v1263_v23 = vsel %vm530_vm0, %v1250_v48, 0 }
 0x39b   : > { %1540 = vmatprep.subr.msk.bf16.mxu1 %vm530_vm0, %v1251_v7 }
 0x39c   : > { %1269 = vmatpush1.bf16.msra.mxu1 %v1263_v23 }
 0x39f   : > { %1541 = vmatmul.mubr.msk.bf16.vlgmr.msra.gmra.mrb[4].mxu1 %vm481_vm1, %v1252_v2 }
 0x472   : > { %v1302_v27 = vpop.f32.mrb[4].mxu1 }
 0x473   : > { %v1304_v16 = vpop.f32.mrb[5].mxu1  ;;  %v1303_v9 = vadd.f32 %v1302_v27, %v1257_v33 }
 0x474   : > { %v1306_v29 = vpop.f32.mrb[6].mxu1  ;;  %v1305_v14 = vadd.f32 %v1304_v16, %v1257_v33 }
 0x475   : > { %v1307_v36 = vpop.f32.mrb[7].mxu1 }
 0x476   : > { %v1312_v32 = vcombine.low %v1303_v9, %v1305_v14 }
 0x478   : > { %v1314_v10 = vadd.f32 %v1312_v32, %v1309_v57 }
 0x47a   : > { %1315 = vst [vmem:[%s415_s25] sm:$0xff] %v1314_v10 }
 0x47b   : > { %1906 = shalt.err (!%p1903_p5)
}
 0x47c   : > { %s1907_s29 = scalar_lea.hbm %s2926_s14, 128  ;;  %s1911_s11 = scalar_lea.hbm %s2981_s6, 256 }
 0x47d   : > { %p1908_p0 = scmp.ne.s32.totalorder %s2926_s14, %s1907_s29  ;;  %p1912_p12 = scmp.lt.u32.totalorder %s2926_s14, %s2981_s6 }
 0x47e   : > { %p1913_p10 = scmp.lt.u32.totalorder %s1911_s11, %s1907_s29  ;;  %p1915_p7 = scmp.lt.u32.totalorder %s1907_s29, %s2926_s14 }
 0x47f   : > { %p1909_p3 = pnand %p1908_p0, %p3218_p8 }
 0x480   : > { %p1914_p4 = por %p1913_p10, %p1912_p12 }
 0x481   : > { %p1910_p1 = pneg %p1909_p3 }
 0x482   : > { %p1916_p9 = por %p1915_p7, %p1914_p4 }
 0x484   : > { %p1917_p6 = pnand %p1916_p9, %p1910_p1 }
 0x486   : > { %1920 = shalt.err (!%p1917_p6)
}
 0x487   : > { %1560 = dma.vmem_to_hbm [thread:$0]  (%p3218_p8), %s2928_s26, 128, %s2926_s14, %s1317_s17  }
 0x488 PF: > { %s3219_s18 = sld [smem:[#allocation18_spill]]  ;;  %s3220_s20 = sld [smem:[#allocation24_spill]] }
 0x489   : > { %s3221_s27 = sld [smem:[#allocation21_spill]] }
 0x48e   : > { %s1345_s9 = sand.u32 1, %s3219_s18   ;;  %p3222_p13 = scmp.ne.s32.totalorder %s3220_s20, 0 }
 0x48f   : > { %p3223_p11 = scmp.ge.s32.totalorder %s3221_s27, 2  ;;  %s1346_s30 = scalar_lea.sflag [#allocation7], %s1345_s9 }
 0x491   : > { %p1576_p2 = pnand %p3223_p11, %p3222_p13 }
 0x493   : > { %1958 = dma.done.wait (!%p1576_p2), %s1346_s30, 128  }
 0x494   : > { %1960 = vsyncadd (!%p1576_p2), %s1346_s30, 4294967168  ;;  %s28_s26 = sadd.s32 1, %s3221_s27   ;;  %s3224_s1 = sld [smem:[#allocation19_spill]] }
 0x495   : > { %p25_p5 = scmp.ge.s32.totalorder %s28_s26, 4   ;;  %s3225_s23 = sld [smem:[#allocation23_spill]] }
 0x496   : > { %s3226_s24 = sld [smem:[#allocation20_spill]]  ;;  %s3227_s25 = sld [smem:[#allocation22_spill]] }
 0x497   : > { %s3228_s21 = smov %s1967_s22  ;;  %27 = sbr.rel (!%p25_p5) target bundleno = 12 (0xc), region = 134 }
 0x49a   : > { %s3229_s22 = smov %s3224_s1 }
 0x49e   :  { %1351 = vsyncpa [#allocation6], 1 }
 0x49f   :  { %1353 = vsyncpa [#allocation6 + $0x1], 1 }
 0x4a0   :  { %1354 = vsyncpa [#allocation9], 1 }
 0x4a1   :  { %1356 = vsyncpa [#allocation9 + $0x1], 1 }
 0x4a2   :  { %1357 = vsyncpa [#allocation12], 1 }
 0x4a3   :  { %1359 = vsyncpa [#allocation12 + $0x1], 1 }
 0x4a4   :  { %1360 = vsyncpa [#allocation7], 1 }
 0x4a5   :  { %1362 = vsyncpa [#allocation7 + $0x1], 1 }

</bundles_post_ra>
